<compile_context>
chip_gen: v6e
topology: v6e:2x2x1
jax: 0.10.0
libtpu: 0.0.40
codegen_flags: <defaults>
</compile_context>

<pallas_src>
import functools

import jax
import jax.numpy as jnp
from jax import lax
from jax.experimental import pallas as pl
from jax.experimental.pallas import tpu as pltpu


def _bert_textrcnn_mlp_kernel(
    tokens_ref,                       # (S, TB, D)  bf16   (time-major)
    wih_ref, bih_ref,                 # (D, 8H) bf16, (1, 8H) f32   fwd||bwd
    whh_f_ref, whh_b_ref,             # (H, 4H) bf16 each
    cw_ref, cb_ref,                   # (K, 2H, H) bf16 (scaled by 1/S), (1, H) f32
    w1_ref, b1_ref,                   # (H, M) bf16, (1, M) f32
    w2_ref, b2_ref,                   # (M, M) bf16, (1, M) f32
    w3_ref, b3_ref,                   # (M, LP) bf16, (1, LP) f32 (zero-padded)
    out_ref,                          # (TB, LP) f32
    gxf_ref, gxb_ref,                 # (S, TB, 4H) f32 scratch
    hf_ref, hb_ref,                   # (S, TB, H)  f32 scratch
    *,
    labels_count,
):
    S, TB, D = tokens_ref.shape
    H = whh_f_ref.shape[0]
    K = cw_ref.shape[0]
    f32 = jnp.float32
    bf16 = jnp.bfloat16

    # ---- LSTM input projection for BOTH directions in one MXU matmul -------
    x2d = tokens_ref[...].reshape(S * TB, D)                         # bf16
    gates_x = (jnp.dot(x2d, wih_ref[...], preferred_element_type=f32)
               + bih_ref[...])                                       # (S*TB, 8H) f32
    gxf_ref[...] = gates_x[:, : 4 * H].reshape(S, TB, 4 * H)
    gxb_ref[...] = gates_x[:, 4 * H:].reshape(S, TB, 4 * H)

    # ---- recurrences (PyTorch gate order i, f, g, o) ------------------------
    def make_step(gx_ref, h_out_ref, whh, time_of):
        def step(j, carry):
            h, c = carry
            t = time_of(j)
            gates = gx_ref[t] + jnp.dot(h.astype(bf16), whh,
                                        preferred_element_type=f32)  # (TB, 4H)
            i_g = jax.nn.sigmoid(gates[:, 0 * H:1 * H])
            f_g = jax.nn.sigmoid(gates[:, 1 * H:2 * H])
            g_g = jnp.tanh(gates[:, 2 * H:3 * H])
            o_g = jax.nn.sigmoid(gates[:, 3 * H:4 * H])
            c = f_g * c + i_g * g_g
            h = o_g * jnp.tanh(c)
            h_out_ref[t] = h
            return h, c
        return step

    h0 = jnp.zeros((TB, H), f32)
    c0 = jnp.zeros((TB, H), f32)
    unroll = S <= 16                      # short sequences: full unroll
    whh_f = whh_f_ref[...]
    whh_b = whh_b_ref[...]
    lax.fori_loop(0, S, make_step(gxf_ref, hf_ref, whh_f, lambda j: j),
                  (h0, c0), unroll=unroll)
    lax.fori_loop(0, S, make_step(gxb_ref, hb_ref, whh_b, lambda j: S - 1 - j),
                  (h0, c0), unroll=unroll)

    # ---- Conv1d (padding=K//2, odd K) folded with the sequence mean --------
    # mean_s(conv(x) + cb) = sum_k window_sum_k @ (cw_k / S) + cb
    hf = hf_ref[...]                                   # (S, TB, H) f32
    hb = hb_ref[...]
    sum_f = jnp.sum(hf, axis=0)                        # (TB, H)
    sum_b = jnp.sum(hb, axis=0)
    pad = K // 2
    acc = jnp.zeros((TB, H), f32)
    for k in range(K):                                 # K is tiny & static
        d = k - pad
        if d < 0:            # this tap's window drops the last (-d) timesteps
            wf = sum_f - jnp.sum(hf[S + d:], axis=0)
            wb = sum_b - jnp.sum(hb[S + d:], axis=0)
        elif d > 0:          # this tap's window drops the first d timesteps
            wf = sum_f - jnp.sum(hf[:d], axis=0)
            wb = sum_b - jnp.sum(hb[:d], axis=0)
        else:
            wf, wb = sum_f, sum_b
        wcat = jnp.concatenate([wf, wb], axis=1).astype(bf16)        # (TB, 2H)
        acc = acc + jnp.dot(wcat, cw_ref[k], preferred_element_type=f32)
    feat = acc + cb_ref[...]                           # (TB, H)
    # dropout == identity (eval mode)

    # ---- MLP: Linear -> ReLU -> Linear -> ReLU -> Linear --------------------
    h1 = jnp.maximum(jnp.dot(feat.astype(bf16), w1_ref[...],
                             preferred_element_type=f32) + b1_ref[...], 0.0)
    h2 = jnp.maximum(jnp.dot(h1.astype(bf16), w2_ref[...],
                             preferred_element_type=f32) + b2_ref[...], 0.0)
    logits = jnp.dot(h2.astype(bf16), w3_ref[...],
                     preferred_element_type=f32) + b3_ref[...]       # (TB, LP)

    # ---- softmax over the first `labels_count` (valid) columns --------------
    col = lax.broadcasted_iota(jnp.int32, logits.shape, 1)
    valid = col < labels_count
    m = jnp.max(jnp.where(valid, logits, -jnp.inf), axis=1, keepdims=True)
    e = jnp.where(valid, jnp.exp(logits - m), 0.0)
    out_ref[...] = e / jnp.sum(e, axis=1, keepdims=True)


def _const_spec(arr):
    n = arr.ndim
    return pl.BlockSpec(arr.shape, lambda i, _n=n: (0,) * _n)


def _pick_batch_tile(B, S, D, H, LP, budget_bytes):
    """Largest batch tile that divides B, keeps the (8,128) block rule
    (multiple of 8 or == B) and fits the per-tile VMEM estimate."""
    if B <= 8:
        return B
    # per-batch-row VMEM: x-gate scratch, hidden scratch, double-buffered token
    # block, double-buffered output block, transient gates_x.
    per_tb = (2 * S * 4 * H * 4
              + 2 * S * H * 4
              + 2 * S * D * 2
              + 2 * LP * 4
              + S * 8 * H * 4)
    cands = [c for c in (256, 128, 64, 32, 16, 8) if B % c == 0]
    if not cands:
        return B
    for c in cands:
        if c * per_tb <= budget_bytes:
            return c
    return cands[-1]


def bert_textrcnn_mlp_forward(tokens, params):
    """tokens: [B, S, D] float32 ("BERT sequence_output"); returns [B, labels]."""
    B, S, D = tokens.shape
    H = params["whh_f"].shape[1]              # PyTorch layout [4H, H]
    M = params["w1"].shape[0]
    L = params["w3"].shape[0]
    LP = ((L + 127) // 128) * 128             # lane-dense padded logits width

    bf16 = jnp.bfloat16
    f32 = jnp.float32

    # ---- host-side weight preprocessing (pre-transpose / concat / pad) -----
    wih = jnp.concatenate([params["wih_f"].T, params["wih_b"].T],
                          axis=1).astype(bf16)                    # [D, 8H]
    bih = jnp.concatenate([params["b_f"], params["b_b"]],
                          axis=1).astype(f32)                     # [1, 8H]
    whh_f = params["whh_f"].T.astype(bf16)                        # [H, 4H]
    whh_b = params["whh_b"].T.astype(bf16)
    # Conv weight: [out=H, in=2H, K] -> [K, 2H, H], mean's 1/S folded in.
    cw = (jnp.transpose(params["cw"], (2, 1, 0)) * (1.0 / S)).astype(bf16)
    cb = params["cb"].astype(f32)                                 # [1, H]
    w1 = params["w1"].T.astype(bf16)                              # [H, M]
    b1 = params["b1"].astype(f32)
    w2 = params["w2"].T.astype(bf16)                              # [M, M]
    b2 = params["b2"].astype(f32)
    w3 = jnp.zeros((M, LP), bf16).at[:, :L].set(params["w3"].T.astype(bf16))
    b3 = jnp.zeros((1, LP), f32).at[:, :L].set(params["b3"].astype(f32))

    # time-major + bf16 tokens: halves DMA bytes, makes per-timestep slabs
    # contiguous so scratch indexing is leading-axis only.
    tokens_t = jnp.transpose(tokens, (1, 0, 2)).astype(bf16)      # [S, B, D]

    TB = _pick_batch_tile(B, S, D, H, LP, budget_bytes=32 * 1024 * 1024)
    grid = (B // TB,)

    weights = [wih, bih, whh_f, whh_b, cw, cb, w1, b1, w2, b2, w3, b3]
    kernel = functools.partial(_bert_textrcnn_mlp_kernel, labels_count=L)

    out = pl.pallas_call(
        kernel,
        out_shape=jax.ShapeDtypeStruct((B, LP), f32),
        grid_spec=pltpu.PrefetchScalarGridSpec(
            num_scalar_prefetch=0,
            grid=grid,
            in_specs=[pl.BlockSpec((S, TB, D), lambda i: (0, i, 0))]
                     + [_const_spec(w) for w in weights],
            out_specs=pl.BlockSpec((TB, LP), lambda i: (i, 0)),
            scratch_shapes=[
                pltpu.VMEM((S, TB, 4 * H), f32),   # fwd x-gates
                pltpu.VMEM((S, TB, 4 * H), f32),   # bwd x-gates
                pltpu.VMEM((S, TB, H), f32),       # fwd hidden states
                pltpu.VMEM((S, TB, H), f32),       # bwd hidden states
            ],
        ),
        compiler_params=pltpu.CompilerParams(
            # batch axis is embarrassingly parallel -> megacore sharding on v7x
            dimension_semantics=("parallel",),
            # explicit scoped-VMEM budget: fits v7x's 64 MiB physical VMEM with
            # headroom, plenty on v5e/v6e (128 MiB).
            vmem_limit_bytes=48 * 1024 * 1024,
        ),
    )(tokens_t, *weights)
    return out[:, :L]


def make_params(key, hidden_dim, rnn_hidden_dim, cnn_kernel_size, mlp_dim, labels_count):
    D, H, K, M, L = hidden_dim, rnn_hidden_dim, cnn_kernel_size, mlp_dim, labels_count
    keys = jax.random.split(key, 16)
    n = iter(keys)

    def init(shape, scale=0.1):
        return (scale * jax.random.normal(next(n), shape)).astype(jnp.float32)

    return {
        # LSTM (PyTorch gate order i,f,g,o); b = b_ih + b_hh folded, stored 2-D
        "wih_f": init((4 * H, D)), "whh_f": init((4 * H, H)), "b_f": init((1, 4 * H)),
        "wih_b": init((4 * H, D)), "whh_b": init((4 * H, H)), "b_b": init((1, 4 * H)),
        # Conv1d: [out_ch=H, in_ch=2H, k]
        "cw": init((H, 2 * H, K)), "cb": init((1, H)),
        # MLP
        "w1": init((M, H)), "b1": init((1, M)),
        "w2": init((M, M)), "b2": init((1, M)),
        "w3": init((L, M)), "b3": init((1, L)),
    }


if __name__ == "__main__":
    # small, forward-consistent shapes
    B, S = 2, 8
    hidden_dim = 32          # BERT hidden size (scaled down from 768)
    rnn_hidden_dim = 16      # scaled down from 256
    cnn_kernel_size = 3      # odd (matches PyTorch same-length conv)
    mlp_dim = 32             # scaled down from 256
    labels_count = 4

    key = jax.random.PRNGKey(0)
    k_tok, k_par = jax.random.split(key)
    tokens = jax.random.normal(k_tok, (B, S, hidden_dim), dtype=jnp.float32)
    params = make_params(k_par, hidden_dim, rnn_hidden_dim, cnn_kernel_size,
                         mlp_dim, labels_count)

    proba = bert_textrcnn_mlp_forward(tokens, params)
    proba = jax.block_until_ready(proba)

    assert proba.shape == (B, labels_count)
    assert bool(jnp.all(jnp.isfinite(proba)))
    # softmax rows must sum to 1
    assert bool(jnp.allclose(jnp.sum(proba, axis=1), 1.0, atol=1e-5))

    print("KERNEL_OK")
</pallas_src>

<mosaic_0001>
module attributes {stable_mosaic.version = 11 : i64} {
  func.func @_bert_textrcnn_mlp_kernel(%arg0: i32, %arg1: memref<8x2x32xbf16, #tpu.memory_space<vmem>>, %arg2: memref<32x128xbf16, #tpu.memory_space<vmem>>, %arg3: memref<1x128xf32, #tpu.memory_space<vmem>>, %arg4: memref<16x64xbf16, #tpu.memory_space<vmem>>, %arg5: memref<16x64xbf16, #tpu.memory_space<vmem>>, %arg6: memref<3x32x16xbf16, #tpu.memory_space<vmem>>, %arg7: memref<1x16xf32, #tpu.memory_space<vmem>>, %arg8: memref<16x32xbf16, #tpu.memory_space<vmem>>, %arg9: memref<1x32xf32, #tpu.memory_space<vmem>>, %arg10: memref<32x32xbf16, #tpu.memory_space<vmem>>, %arg11: memref<1x32xf32, #tpu.memory_space<vmem>>, %arg12: memref<32x128xbf16, #tpu.memory_space<vmem>>, %arg13: memref<1x128xf32, #tpu.memory_space<vmem>>, %arg14: memref<2x128xf32, #tpu.memory_space<vmem>>, %arg15: memref<8x2x64xf32, #tpu.memory_space<vmem>>, %arg16: memref<8x2x64xf32, #tpu.memory_space<vmem>>, %arg17: memref<8x2x16xf32, #tpu.memory_space<vmem>>, %arg18: memref<8x2x16xf32, #tpu.memory_space<vmem>>) attributes {dimension_semantics = [#tpu.dimension_semantics<parallel>], iteration_bounds = array<i64: 1>, scalar_prefetch = 0 : i64, scratch_operands = 4 : i64, tpu.core_type = #tpu.core_type<tc>, window_params = [{transform_indices = @transform_0, window_bounds = array<i64: 8, 2, 32>}, {pipeline_mode = #tpu.pipeline_mode<synchronous>, transform_indices = @transform_1, window_bounds = array<i64: 32, 128>}, {pipeline_mode = #tpu.pipeline_mode<synchronous>, transform_indices = @transform_2, window_bounds = array<i64: 1, 128>}, {pipeline_mode = #tpu.pipeline_mode<synchronous>, transform_indices = @transform_3, window_bounds = array<i64: 16, 64>}, {pipeline_mode = #tpu.pipeline_mode<synchronous>, transform_indices = @transform_4, window_bounds = array<i64: 16, 64>}, {pipeline_mode = #tpu.pipeline_mode<synchronous>, transform_indices = @transform_5, window_bounds = array<i64: 3, 32, 16>}, {pipeline_mode = #tpu.pipeline_mode<synchronous>, transform_indices = @transform_6, window_bounds = array<i64: 1, 16>}, {pipeline_mode = #tpu.pipeline_mode<synchronous>, transform_indices = @transform_7, window_bounds = array<i64: 16, 32>}, {pipeline_mode = #tpu.pipeline_mode<synchronous>, transform_indices = @transform_8, window_bounds = array<i64: 1, 32>}, {pipeline_mode = #tpu.pipeline_mode<synchronous>, transform_indices = @transform_9, window_bounds = array<i64: 32, 32>}, {pipeline_mode = #tpu.pipeline_mode<synchronous>, transform_indices = @transform_10, window_bounds = array<i64: 1, 32>}, {pipeline_mode = #tpu.pipeline_mode<synchronous>, transform_indices = @transform_11, window_bounds = array<i64: 32, 128>}, {pipeline_mode = #tpu.pipeline_mode<synchronous>, transform_indices = @transform_12, window_bounds = array<i64: 1, 128>}, {transform_indices = @transform_13, window_bounds = array<i64: 2, 128>}]} {
    %c0 = arith.constant 0 : index
    %c0_0 = arith.constant 0 : index
    %c0_1 = arith.constant 0 : index
    %0 = vector.load %arg1[%c0, %c0_0, %c0_1] : memref<8x2x32xbf16, #tpu.memory_space<vmem>>, vector<8x2x32xbf16>
    %1 = vector.shape_cast %0 : vector<8x2x32xbf16> to vector<16x32xbf16>
    %c0_2 = arith.constant 0 : index
    %c0_3 = arith.constant 0 : index
    %2 = vector.load %arg2[%c0_2, %c0_3] : memref<32x128xbf16, #tpu.memory_space<vmem>>, vector<32x128xbf16>
    %cst = arith.constant dense<0.000000e+00> : vector<16x128xf32>
    %3 = tpu.matmul %1, %2, %cst {dimension_numbers = #tpu.dot_dimension_numbers<[1], [0], [0], [1], [0, 0, 1, 1], [], []>} : vector<16x32xbf16>, vector<32x128xbf16>, vector<16x128xf32> -> vector<16x128xf32>
    %c0_4 = arith.constant 0 : index
    %c0_5 = arith.constant 0 : index
    %4 = vector.load %arg3[%c0_4, %c0_5] : memref<1x128xf32, #tpu.memory_space<vmem>>, vector<1x128xf32>
    %5 = vector.broadcast %4 : vector<1x128xf32> to vector<16x128xf32>
    %6 = arith.addf %3, %5 : vector<16x128xf32>
    %7 = vector.extract_strided_slice %6 {offsets = [0, 0], sizes = [16, 64], strides = [1, 1]} : vector<16x128xf32> to vector<16x64xf32>
    %8 = vector.shape_cast %7 : vector<16x64xf32> to vector<8x2x64xf32>
    %c0_6 = arith.constant 0 : index
    %c0_7 = arith.constant 0 : index
    %c0_8 = arith.constant 0 : index
    %9 = vector.load %arg15[%c0_6, %c0_7, %c0_8] : memref<8x2x64xf32, #tpu.memory_space<vmem>>, vector<8x2x64xf32>
    tpu.vector_store %arg15[%c0_6, %c0_7, %c0_8], %8 {strides = array<i32>} : memref<8x2x64xf32, #tpu.memory_space<vmem>>, vector<8x2x64xf32>,
    %10 = vector.extract_strided_slice %6 {offsets = [0, 64], sizes = [16, 64], strides = [1, 1]} : vector<16x128xf32> to vector<16x64xf32>
    %11 = vector.shape_cast %10 : vector<16x64xf32> to vector<8x2x64xf32>
    %c0_9 = arith.constant 0 : index
    %c0_10 = arith.constant 0 : index
    %c0_11 = arith.constant 0 : index
    %12 = vector.load %arg16[%c0_9, %c0_10, %c0_11] : memref<8x2x64xf32, #tpu.memory_space<vmem>>, vector<8x2x64xf32>
    tpu.vector_store %arg16[%c0_9, %c0_10, %c0_11], %11 {strides = array<i32>} : memref<8x2x64xf32, #tpu.memory_space<vmem>>, vector<8x2x64xf32>,
    %cst_12 = arith.constant 0.000000e+00 : f32
    %13 = vector.broadcast %cst_12 : f32 to vector<2x16xf32>
    %cst_13 = arith.constant 0.000000e+00 : f32
    %14 = vector.broadcast %cst_13 : f32 to vector<2x16xf32>
    %c0_14 = arith.constant 0 : index
    %c0_15 = arith.constant 0 : index
    %15 = vector.load %arg4[%c0_14, %c0_15] : memref<16x64xbf16, #tpu.memory_space<vmem>>, vector<16x64xbf16>
    %c0_16 = arith.constant 0 : index
    %c0_17 = arith.constant 0 : index
    %16 = vector.load %arg5[%c0_16, %c0_17] : memref<16x64xbf16, #tpu.memory_space<vmem>>, vector<16x64xbf16>
    %c0_i32 = arith.constant 0 : i32
    %17 = arith.index_cast %c0_i32 : i32 to index
    %c0_18 = arith.constant 0 : index
    %c0_19 = arith.constant 0 : index
    %18 = vector.load %arg15[%17, %c0_18, %c0_19] : memref<8x2x64xf32, #tpu.memory_space<vmem>>, vector<1x2x64xf32>
    %19 = vector.shape_cast %18 : vector<1x2x64xf32> to vector<2x64xf32>
    %20 = arith.truncf %13 : vector<2x16xf32> to vector<2x16xbf16>
    %cst_20 = arith.constant dense<0.000000e+00> : vector<2x64xf32>
    %21 = tpu.matmul %20, %15, %cst_20 {dimension_numbers = #tpu.dot_dimension_numbers<[1], [0], [0], [1], [0, 0, 1, 1], [], []>} : vector<2x16xbf16>, vector<16x64xbf16>, vector<2x64xf32> -> vector<2x64xf32>
    %22 = arith.addf %19, %21 : vector<2x64xf32>
    %23 = vector.extract_strided_slice %22 {offsets = [0, 0], sizes = [2, 16], strides = [1, 1]} : vector<2x64xf32> to vector<2x16xf32>
    %24 = arith.negf %23 : vector<2x16xf32>
    %25 = math.exp %24 : vector<2x16xf32>
    %cst_21 = arith.constant 1.000000e+00 : f32
    %26 = vector.broadcast %cst_21 : f32 to vector<2x16xf32>
    %27 = arith.addf %26, %25 : vector<2x16xf32>
    %28 = arith.divf %26, %27 : vector<2x16xf32>
    %29 = vector.extract_strided_slice %22 {offsets = [0, 16], sizes = [2, 16], strides = [1, 1]} : vector<2x64xf32> to vector<2x16xf32>
    %30 = arith.negf %29 : vector<2x16xf32>
    %31 = math.exp %30 : vector<2x16xf32>
    %cst_22 = arith.constant 1.000000e+00 : f32
    %32 = vector.broadcast %cst_22 : f32 to vector<2x16xf32>
    %33 = arith.addf %32, %31 : vector<2x16xf32>
    %34 = arith.divf %32, %33 : vector<2x16xf32>
    %35 = vector.extract_strided_slice %22 {offsets = [0, 32], sizes = [2, 16], strides = [1, 1]} : vector<2x64xf32> to vector<2x16xf32>
    %36 = math.tanh %35 : vector<2x16xf32>
    %37 = vector.extract_strided_slice %22 {offsets = [0, 48], sizes = [2, 16], strides = [1, 1]} : vector<2x64xf32> to vector<2x16xf32>
    %38 = arith.negf %37 : vector<2x16xf32>
    %39 = math.exp %38 : vector<2x16xf32>
    %cst_23 = arith.constant 1.000000e+00 : f32
    %40 = vector.broadcast %cst_23 : f32 to vector<2x16xf32>
    %41 = arith.addf %40, %39 : vector<2x16xf32>
    %42 = arith.divf %40, %41 : vector<2x16xf32>
    %43 = arith.mulf %34, %14 : vector<2x16xf32>
    %44 = arith.mulf %28, %36 : vector<2x16xf32>
    %45 = arith.addf %43, %44 : vector<2x16xf32>
    %46 = math.tanh %45 : vector<2x16xf32>
    %47 = arith.mulf %42, %46 : vector<2x16xf32>
    %48 = arith.index_cast %c0_i32 : i32 to index
    %c0_24 = arith.constant 0 : index
    %c0_25 = arith.constant 0 : index
    %49 = vector.load %arg17[%48, %c0_24, %c0_25] : memref<8x2x16xf32, #tpu.memory_space<vmem>>, vector<1x2x16xf32>
    %50 = vector.shape_cast %49 : vector<1x2x16xf32> to vector<2x16xf32>
    %51 = vector.shape_cast %47 : vector<2x16xf32> to vector<1x2x16xf32>
    tpu.vector_store %arg17[%48, %c0_24, %c0_25], %51 {strides = array<i32>} : memref<8x2x16xf32, #tpu.memory_space<vmem>>, vector<1x2x16xf32>,
    %c1_i32 = arith.constant 1 : i32
    %52 = arith.index_cast %c1_i32 : i32 to index
    %c0_26 = arith.constant 0 : index
    %c0_27 = arith.constant 0 : index
    %53 = vector.load %arg15[%52, %c0_26, %c0_27] : memref<8x2x64xf32, #tpu.memory_space<vmem>>, vector<1x2x64xf32>
    %54 = vector.shape_cast %53 : vector<1x2x64xf32> to vector<2x64xf32>
    %55 = arith.truncf %47 : vector<2x16xf32> to vector<2x16xbf16>
    %cst_28 = arith.constant dense<0.000000e+00> : vector<2x64xf32>
    %56 = tpu.matmul %55, %15, %cst_28 {dimension_numbers = #tpu.dot_dimension_numbers<[1], [0], [0], [1], [0, 0, 1, 1], [], []>} : vector<2x16xbf16>, vector<16x64xbf16>, vector<2x64xf32> -> vector<2x64xf32>
    %57 = arith.addf %54, %56 : vector<2x64xf32>
    %58 = vector.extract_strided_slice %57 {offsets = [0, 0], sizes = [2, 16], strides = [1, 1]} : vector<2x64xf32> to vector<2x16xf32>
    %59 = arith.negf %58 : vector<2x16xf32>
    %60 = math.exp %59 : vector<2x16xf32>
    %cst_29 = arith.constant 1.000000e+00 : f32
    %61 = vector.broadcast %cst_29 : f32 to vector<2x16xf32>
    %62 = arith.addf %61, %60 : vector<2x16xf32>
    %63 = arith.divf %61, %62 : vector<2x16xf32>
    %64 = vector.extract_strided_slice %57 {offsets = [0, 16], sizes = [2, 16], strides = [1, 1]} : vector<2x64xf32> to vector<2x16xf32>
    %65 = arith.negf %64 : vector<2x16xf32>
    %66 = math.exp %65 : vector<2x16xf32>
    %cst_30 = arith.constant 1.000000e+00 : f32
    %67 = vector.broadcast %cst_30 : f32 to vector<2x16xf32>
    %68 = arith.addf %67, %66 : vector<2x16xf32>
    %69 = arith.divf %67, %68 : vector<2x16xf32>
    %70 = vector.extract_strided_slice %57 {offsets = [0, 32], sizes = [2, 16], strides = [1, 1]} : vector<2x64xf32> to vector<2x16xf32>
    %71 = math.tanh %70 : vector<2x16xf32>
    %72 = vector.extract_strided_slice %57 {offsets = [0, 48], sizes = [2, 16], strides = [1, 1]} : vector<2x64xf32> to vector<2x16xf32>
    %73 = arith.negf %72 : vector<2x16xf32>
    %74 = math.exp %73 : vector<2x16xf32>
    %cst_31 = arith.constant 1.000000e+00 : f32
    %75 = vector.broadcast %cst_31 : f32 to vector<2x16xf32>
    %76 = arith.addf %75, %74 : vector<2x16xf32>
    %77 = arith.divf %75, %76 : vector<2x16xf32>
    %78 = arith.mulf %69, %45 : vector<2x16xf32>
    %79 = arith.mulf %63, %71 : vector<2x16xf32>
    %80 = arith.addf %78, %79 : vector<2x16xf32>
    %81 = math.tanh %80 : vector<2x16xf32>
    %82 = arith.mulf %77, %81 : vector<2x16xf32>
    %83 = arith.index_cast %c1_i32 : i32 to index
    %c0_32 = arith.constant 0 : index
    %c0_33 = arith.constant 0 : index
    %84 = vector.load %arg17[%83, %c0_32, %c0_33] : memref<8x2x16xf32, #tpu.memory_space<vmem>>, vector<1x2x16xf32>
    %85 = vector.shape_cast %84 : vector<1x2x16xf32> to vector<2x16xf32>
    %86 = vector.shape_cast %82 : vector<2x16xf32> to vector<1x2x16xf32>
    tpu.vector_store %arg17[%83, %c0_32, %c0_33], %86 {strides = array<i32>} : memref<8x2x16xf32, #tpu.memory_space<vmem>>, vector<1x2x16xf32>,
    %c2_i32 = arith.constant 2 : i32
    %87 = arith.index_cast %c2_i32 : i32 to index
    %c0_34 = arith.constant 0 : index
    %c0_35 = arith.constant 0 : index
    %88 = vector.load %arg15[%87, %c0_34, %c0_35] : memref<8x2x64xf32, #tpu.memory_space<vmem>>, vector<1x2x64xf32>
    %89 = vector.shape_cast %88 : vector<1x2x64xf32> to vector<2x64xf32>
    %90 = arith.truncf %82 : vector<2x16xf32> to vector<2x16xbf16>
    %cst_36 = arith.constant dense<0.000000e+00> : vector<2x64xf32>
    %91 = tpu.matmul %90, %15, %cst_36 {dimension_numbers = #tpu.dot_dimension_numbers<[1], [0], [0], [1], [0, 0, 1, 1], [], []>} : vector<2x16xbf16>, vector<16x64xbf16>, vector<2x64xf32> -> vector<2x64xf32>
    %92 = arith.addf %89, %91 : vector<2x64xf32>
    %93 = vector.extract_strided_slice %92 {offsets = [0, 0], sizes = [2, 16], strides = [1, 1]} : vector<2x64xf32> to vector<2x16xf32>
    %94 = arith.negf %93 : vector<2x16xf32>
    %95 = math.exp %94 : vector<2x16xf32>
    %cst_37 = arith.constant 1.000000e+00 : f32
    %96 = vector.broadcast %cst_37 : f32 to vector<2x16xf32>
    %97 = arith.addf %96, %95 : vector<2x16xf32>
    %98 = arith.divf %96, %97 : vector<2x16xf32>
    %99 = vector.extract_strided_slice %92 {offsets = [0, 16], sizes = [2, 16], strides = [1, 1]} : vector<2x64xf32> to vector<2x16xf32>
    %100 = arith.negf %99 : vector<2x16xf32>
    %101 = math.exp %100 : vector<2x16xf32>
    %cst_38 = arith.constant 1.000000e+00 : f32
    %102 = vector.broadcast %cst_38 : f32 to vector<2x16xf32>
    %103 = arith.addf %102, %101 : vector<2x16xf32>
    %104 = arith.divf %102, %103 : vector<2x16xf32>
    %105 = vector.extract_strided_slice %92 {offsets = [0, 32], sizes = [2, 16], strides = [1, 1]} : vector<2x64xf32> to vector<2x16xf32>
    %106 = math.tanh %105 : vector<2x16xf32>
    %107 = vector.extract_strided_slice %92 {offsets = [0, 48], sizes = [2, 16], strides = [1, 1]} : vector<2x64xf32> to vector<2x16xf32>
    %108 = arith.negf %107 : vector<2x16xf32>
    %109 = math.exp %108 : vector<2x16xf32>
    %cst_39 = arith.constant 1.000000e+00 : f32
    %110 = vector.broadcast %cst_39 : f32 to vector<2x16xf32>
    %111 = arith.addf %110, %109 : vector<2x16xf32>
    %112 = arith.divf %110, %111 : vector<2x16xf32>
    %113 = arith.mulf %104, %80 : vector<2x16xf32>
    %114 = arith.mulf %98, %106 : vector<2x16xf32>
    %115 = arith.addf %113, %114 : vector<2x16xf32>
    %116 = math.tanh %115 : vector<2x16xf32>
    %117 = arith.mulf %112, %116 : vector<2x16xf32>
    %118 = arith.index_cast %c2_i32 : i32 to index
    %c0_40 = arith.constant 0 : index
    %c0_41 = arith.constant 0 : index
    %119 = vector.load %arg17[%118, %c0_40, %c0_41] : memref<8x2x16xf32, #tpu.memory_space<vmem>>, vector<1x2x16xf32>
    %120 = vector.shape_cast %119 : vector<1x2x16xf32> to vector<2x16xf32>
    %121 = vector.shape_cast %117 : vector<2x16xf32> to vector<1x2x16xf32>
    tpu.vector_store %arg17[%118, %c0_40, %c0_41], %121 {strides = array<i32>} : memref<8x2x16xf32, #tpu.memory_space<vmem>>, vector<1x2x16xf32>,
    %c3_i32 = arith.constant 3 : i32
    %122 = arith.index_cast %c3_i32 : i32 to index
    %c0_42 = arith.constant 0 : index
    %c0_43 = arith.constant 0 : index
    %123 = vector.load %arg15[%122, %c0_42, %c0_43] : memref<8x2x64xf32, #tpu.memory_space<vmem>>, vector<1x2x64xf32>
    %124 = vector.shape_cast %123 : vector<1x2x64xf32> to vector<2x64xf32>
    %125 = arith.truncf %117 : vector<2x16xf32> to vector<2x16xbf16>
    %cst_44 = arith.constant dense<0.000000e+00> : vector<2x64xf32>
    %126 = tpu.matmul %125, %15, %cst_44 {dimension_numbers = #tpu.dot_dimension_numbers<[1], [0], [0], [1], [0, 0, 1, 1], [], []>} : vector<2x16xbf16>, vector<16x64xbf16>, vector<2x64xf32> -> vector<2x64xf32>
    %127 = arith.addf %124, %126 : vector<2x64xf32>
    %128 = vector.extract_strided_slice %127 {offsets = [0, 0], sizes = [2, 16], strides = [1, 1]} : vector<2x64xf32> to vector<2x16xf32>
    %129 = arith.negf %128 : vector<2x16xf32>
    %130 = math.exp %129 : vector<2x16xf32>
    %cst_45 = arith.constant 1.000000e+00 : f32
    %131 = vector.broadcast %cst_45 : f32 to vector<2x16xf32>
    %132 = arith.addf %131, %130 : vector<2x16xf32>
    %133 = arith.divf %131, %132 : vector<2x16xf32>
    %134 = vector.extract_strided_slice %127 {offsets = [0, 16], sizes = [2, 16], strides = [1, 1]} : vector<2x64xf32> to vector<2x16xf32>
    %135 = arith.negf %134 : vector<2x16xf32>
    %136 = math.exp %135 : vector<2x16xf32>
    %cst_46 = arith.constant 1.000000e+00 : f32
    %137 = vector.broadcast %cst_46 : f32 to vector<2x16xf32>
    %138 = arith.addf %137, %136 : vector<2x16xf32>
    %139 = arith.divf %137, %138 : vector<2x16xf32>
    %140 = vector.extract_strided_slice %127 {offsets = [0, 32], sizes = [2, 16], strides = [1, 1]} : vector<2x64xf32> to vector<2x16xf32>
    %141 = math.tanh %140 : vector<2x16xf32>
    %142 = vector.extract_strided_slice %127 {offsets = [0, 48], sizes = [2, 16], strides = [1, 1]} : vector<2x64xf32> to vector<2x16xf32>
    %143 = arith.negf %142 : vector<2x16xf32>
    %144 = math.exp %143 : vector<2x16xf32>
    %cst_47 = arith.constant 1.000000e+00 : f32
    %145 = vector.broadcast %cst_47 : f32 to vector<2x16xf32>
    %146 = arith.addf %145, %144 : vector<2x16xf32>
    %147 = arith.divf %145, %146 : vector<2x16xf32>
    %148 = arith.mulf %139, %115 : vector<2x16xf32>
    %149 = arith.mulf %133, %141 : vector<2x16xf32>
    %150 = arith.addf %148, %149 : vector<2x16xf32>
    %151 = math.tanh %150 : vector<2x16xf32>
    %152 = arith.mulf %147, %151 : vector<2x16xf32>
    %153 = arith.index_cast %c3_i32 : i32 to index
    %c0_48 = arith.constant 0 : index
    %c0_49 = arith.constant 0 : index
    %154 = vector.load %arg17[%153, %c0_48, %c0_49] : memref<8x2x16xf32, #tpu.memory_space<vmem>>, vector<1x2x16xf32>
    %155 = vector.shape_cast %154 : vector<1x2x16xf32> to vector<2x16xf32>
    %156 = vector.shape_cast %152 : vector<2x16xf32> to vector<1x2x16xf32>
    tpu.vector_store %arg17[%153, %c0_48, %c0_49], %156 {strides = array<i32>} : memref<8x2x16xf32, #tpu.memory_space<vmem>>, vector<1x2x16xf32>,
    %c4_i32 = arith.constant 4 : i32
    %157 = arith.index_cast %c4_i32 : i32 to index
    %c0_50 = arith.constant 0 : index
    %c0_51 = arith.constant 0 : index
    %158 = vector.load %arg15[%157, %c0_50, %c0_51] : memref<8x2x64xf32, #tpu.memory_space<vmem>>, vector<1x2x64xf32>
    %159 = vector.shape_cast %158 : vector<1x2x64xf32> to vector<2x64xf32>
    %160 = arith.truncf %152 : vector<2x16xf32> to vector<2x16xbf16>
    %cst_52 = arith.constant dense<0.000000e+00> : vector<2x64xf32>
    %161 = tpu.matmul %160, %15, %cst_52 {dimension_numbers = #tpu.dot_dimension_numbers<[1], [0], [0], [1], [0, 0, 1, 1], [], []>} : vector<2x16xbf16>, vector<16x64xbf16>, vector<2x64xf32> -> vector<2x64xf32>
    %162 = arith.addf %159, %161 : vector<2x64xf32>
    %163 = vector.extract_strided_slice %162 {offsets = [0, 0], sizes = [2, 16], strides = [1, 1]} : vector<2x64xf32> to vector<2x16xf32>
    %164 = arith.negf %163 : vector<2x16xf32>
    %165 = math.exp %164 : vector<2x16xf32>
    %cst_53 = arith.constant 1.000000e+00 : f32
    %166 = vector.broadcast %cst_53 : f32 to vector<2x16xf32>
    %167 = arith.addf %166, %165 : vector<2x16xf32>
    %168 = arith.divf %166, %167 : vector<2x16xf32>
    %169 = vector.extract_strided_slice %162 {offsets = [0, 16], sizes = [2, 16], strides = [1, 1]} : vector<2x64xf32> to vector<2x16xf32>
    %170 = arith.negf %169 : vector<2x16xf32>
    %171 = math.exp %170 : vector<2x16xf32>
    %cst_54 = arith.constant 1.000000e+00 : f32
    %172 = vector.broadcast %cst_54 : f32 to vector<2x16xf32>
    %173 = arith.addf %172, %171 : vector<2x16xf32>
    %174 = arith.divf %172, %173 : vector<2x16xf32>
    %175 = vector.extract_strided_slice %162 {offsets = [0, 32], sizes = [2, 16], strides = [1, 1]} : vector<2x64xf32> to vector<2x16xf32>
    %176 = math.tanh %175 : vector<2x16xf32>
    %177 = vector.extract_strided_slice %162 {offsets = [0, 48], sizes = [2, 16], strides = [1, 1]} : vector<2x64xf32> to vector<2x16xf32>
    %178 = arith.negf %177 : vector<2x16xf32>
    %179 = math.exp %178 : vector<2x16xf32>
    %cst_55 = arith.constant 1.000000e+00 : f32
    %180 = vector.broadcast %cst_55 : f32 to vector<2x16xf32>
    %181 = arith.addf %180, %179 : vector<2x16xf32>
    %182 = arith.divf %180, %181 : vector<2x16xf32>
    %183 = arith.mulf %174, %150 : vector<2x16xf32>
    %184 = arith.mulf %168, %176 : vector<2x16xf32>
    %185 = arith.addf %183, %184 : vector<2x16xf32>
    %186 = math.tanh %185 : vector<2x16xf32>
    %187 = arith.mulf %182, %186 : vector<2x16xf32>
    %188 = arith.index_cast %c4_i32 : i32 to index
    %c0_56 = arith.constant 0 : index
    %c0_57 = arith.constant 0 : index
    %189 = vector.load %arg17[%188, %c0_56, %c0_57] : memref<8x2x16xf32, #tpu.memory_space<vmem>>, vector<1x2x16xf32>
    %190 = vector.shape_cast %189 : vector<1x2x16xf32> to vector<2x16xf32>
    %191 = vector.shape_cast %187 : vector<2x16xf32> to vector<1x2x16xf32>
    tpu.vector_store %arg17[%188, %c0_56, %c0_57], %191 {strides = array<i32>} : memref<8x2x16xf32, #tpu.memory_space<vmem>>, vector<1x2x16xf32>,
    %c5_i32 = arith.constant 5 : i32
    %192 = arith.index_cast %c5_i32 : i32 to index
    %c0_58 = arith.constant 0 : index
    %c0_59 = arith.constant 0 : index
    %193 = vector.load %arg15[%192, %c0_58, %c0_59] : memref<8x2x64xf32, #tpu.memory_space<vmem>>, vector<1x2x64xf32>
    %194 = vector.shape_cast %193 : vector<1x2x64xf32> to vector<2x64xf32>
    %195 = arith.truncf %187 : vector<2x16xf32> to vector<2x16xbf16>
    %cst_60 = arith.constant dense<0.000000e+00> : vector<2x64xf32>
    %196 = tpu.matmul %195, %15, %cst_60 {dimension_numbers = #tpu.dot_dimension_numbers<[1], [0], [0], [1], [0, 0, 1, 1], [], []>} : vector<2x16xbf16>, vector<16x64xbf16>, vector<2x64xf32> -> vector<2x64xf32>
    %197 = arith.addf %194, %196 : vector<2x64xf32>
    %198 = vector.extract_strided_slice %197 {offsets = [0, 0], sizes = [2, 16], strides = [1, 1]} : vector<2x64xf32> to vector<2x16xf32>
    %199 = arith.negf %198 : vector<2x16xf32>
    %200 = math.exp %199 : vector<2x16xf32>
    %cst_61 = arith.constant 1.000000e+00 : f32
    %201 = vector.broadcast %cst_61 : f32 to vector<2x16xf32>
    %202 = arith.addf %201, %200 : vector<2x16xf32>
    %203 = arith.divf %201, %202 : vector<2x16xf32>
    %204 = vector.extract_strided_slice %197 {offsets = [0, 16], sizes = [2, 16], strides = [1, 1]} : vector<2x64xf32> to vector<2x16xf32>
    %205 = arith.negf %204 : vector<2x16xf32>
    %206 = math.exp %205 : vector<2x16xf32>
    %cst_62 = arith.constant 1.000000e+00 : f32
    %207 = vector.broadcast %cst_62 : f32 to vector<2x16xf32>
    %208 = arith.addf %207, %206 : vector<2x16xf32>
    %209 = arith.divf %207, %208 : vector<2x16xf32>
    %210 = vector.extract_strided_slice %197 {offsets = [0, 32], sizes = [2, 16], strides = [1, 1]} : vector<2x64xf32> to vector<2x16xf32>
    %211 = math.tanh %210 : vector<2x16xf32>
    %212 = vector.extract_strided_slice %197 {offsets = [0, 48], sizes = [2, 16], strides = [1, 1]} : vector<2x64xf32> to vector<2x16xf32>
    %213 = arith.negf %212 : vector<2x16xf32>
    %214 = math.exp %213 : vector<2x16xf32>
    %cst_63 = arith.constant 1.000000e+00 : f32
    %215 = vector.broadcast %cst_63 : f32 to vector<2x16xf32>
    %216 = arith.addf %215, %214 : vector<2x16xf32>
    %217 = arith.divf %215, %216 : vector<2x16xf32>
    %218 = arith.mulf %209, %185 : vector<2x16xf32>
    %219 = arith.mulf %203, %211 : vector<2x16xf32>
    %220 = arith.addf %218, %219 : vector<2x16xf32>
    %221 = math.tanh %220 : vector<2x16xf32>
    %222 = arith.mulf %217, %221 : vector<2x16xf32>
    %223 = arith.index_cast %c5_i32 : i32 to index
    %c0_64 = arith.constant 0 : index
    %c0_65 = arith.constant 0 : index
    %224 = vector.load %arg17[%223, %c0_64, %c0_65] : memref<8x2x16xf32, #tpu.memory_space<vmem>>, vector<1x2x16xf32>
    %225 = vector.shape_cast %224 : vector<1x2x16xf32> to vector<2x16xf32>
    %226 = vector.shape_cast %222 : vector<2x16xf32> to vector<1x2x16xf32>
    tpu.vector_store %arg17[%223, %c0_64, %c0_65], %226 {strides = array<i32>} : memref<8x2x16xf32, #tpu.memory_space<vmem>>, vector<1x2x16xf32>,
    %c6_i32 = arith.constant 6 : i32
    %227 = arith.index_cast %c6_i32 : i32 to index
    %c0_66 = arith.constant 0 : index
    %c0_67 = arith.constant 0 : index
    %228 = vector.load %arg15[%227, %c0_66, %c0_67] : memref<8x2x64xf32, #tpu.memory_space<vmem>>, vector<1x2x64xf32>
    %229 = vector.shape_cast %228 : vector<1x2x64xf32> to vector<2x64xf32>
    %230 = arith.truncf %222 : vector<2x16xf32> to vector<2x16xbf16>
    %cst_68 = arith.constant dense<0.000000e+00> : vector<2x64xf32>
    %231 = tpu.matmul %230, %15, %cst_68 {dimension_numbers = #tpu.dot_dimension_numbers<[1], [0], [0], [1], [0, 0, 1, 1], [], []>} : vector<2x16xbf16>, vector<16x64xbf16>, vector<2x64xf32> -> vector<2x64xf32>
    %232 = arith.addf %229, %231 : vector<2x64xf32>
    %233 = vector.extract_strided_slice %232 {offsets = [0, 0], sizes = [2, 16], strides = [1, 1]} : vector<2x64xf32> to vector<2x16xf32>
    %234 = arith.negf %233 : vector<2x16xf32>
    %235 = math.exp %234 : vector<2x16xf32>
    %cst_69 = arith.constant 1.000000e+00 : f32
    %236 = vector.broadcast %cst_69 : f32 to vector<2x16xf32>
    %237 = arith.addf %236, %235 : vector<2x16xf32>
    %238 = arith.divf %236, %237 : vector<2x16xf32>
    %239 = vector.extract_strided_slice %232 {offsets = [0, 16], sizes = [2, 16], strides = [1, 1]} : vector<2x64xf32> to vector<2x16xf32>
    %240 = arith.negf %239 : vector<2x16xf32>
    %241 = math.exp %240 : vector<2x16xf32>
    %cst_70 = arith.constant 1.000000e+00 : f32
    %242 = vector.broadcast %cst_70 : f32 to vector<2x16xf32>
    %243 = arith.addf %242, %241 : vector<2x16xf32>
    %244 = arith.divf %242, %243 : vector<2x16xf32>
    %245 = vector.extract_strided_slice %232 {offsets = [0, 32], sizes = [2, 16], strides = [1, 1]} : vector<2x64xf32> to vector<2x16xf32>
    %246 = math.tanh %245 : vector<2x16xf32>
    %247 = vector.extract_strided_slice %232 {offsets = [0, 48], sizes = [2, 16], strides = [1, 1]} : vector<2x64xf32> to vector<2x16xf32>
    %248 = arith.negf %247 : vector<2x16xf32>
    %249 = math.exp %248 : vector<2x16xf32>
    %cst_71 = arith.constant 1.000000e+00 : f32
    %250 = vector.broadcast %cst_71 : f32 to vector<2x16xf32>
    %251 = arith.addf %250, %249 : vector<2x16xf32>
    %252 = arith.divf %250, %251 : vector<2x16xf32>
    %253 = arith.mulf %244, %220 : vector<2x16xf32>
    %254 = arith.mulf %238, %246 : vector<2x16xf32>
    %255 = arith.addf %253, %254 : vector<2x16xf32>
    %256 = math.tanh %255 : vector<2x16xf32>
    %257 = arith.mulf %252, %256 : vector<2x16xf32>
    %258 = arith.index_cast %c6_i32 : i32 to index
    %c0_72 = arith.constant 0 : index
    %c0_73 = arith.constant 0 : index
    %259 = vector.load %arg17[%258, %c0_72, %c0_73] : memref<8x2x16xf32, #tpu.memory_space<vmem>>, vector<1x2x16xf32>
    %260 = vector.shape_cast %259 : vector<1x2x16xf32> to vector<2x16xf32>
    %261 = vector.shape_cast %257 : vector<2x16xf32> to vector<1x2x16xf32>
    tpu.vector_store %arg17[%258, %c0_72, %c0_73], %261 {strides = array<i32>} : memref<8x2x16xf32, #tpu.memory_space<vmem>>, vector<1x2x16xf32>,
    %c7_i32 = arith.constant 7 : i32
    %262 = arith.index_cast %c7_i32 : i32 to index
    %c0_74 = arith.constant 0 : index
    %c0_75 = arith.constant 0 : index
    %263 = vector.load %arg15[%262, %c0_74, %c0_75] : memref<8x2x64xf32, #tpu.memory_space<vmem>>, vector<1x2x64xf32>
    %264 = vector.shape_cast %263 : vector<1x2x64xf32> to vector<2x64xf32>
    %265 = arith.truncf %257 : vector<2x16xf32> to vector<2x16xbf16>
    %cst_76 = arith.constant dense<0.000000e+00> : vector<2x64xf32>
    %266 = tpu.matmul %265, %15, %cst_76 {dimension_numbers = #tpu.dot_dimension_numbers<[1], [0], [0], [1], [0, 0, 1, 1], [], []>} : vector<2x16xbf16>, vector<16x64xbf16>, vector<2x64xf32> -> vector<2x64xf32>
    %267 = arith.addf %264, %266 : vector<2x64xf32>
    %268 = vector.extract_strided_slice %267 {offsets = [0, 0], sizes = [2, 16], strides = [1, 1]} : vector<2x64xf32> to vector<2x16xf32>
    %269 = arith.negf %268 : vector<2x16xf32>
    %270 = math.exp %269 : vector<2x16xf32>
    %cst_77 = arith.constant 1.000000e+00 : f32
    %271 = vector.broadcast %cst_77 : f32 to vector<2x16xf32>
    %272 = arith.addf %271, %270 : vector<2x16xf32>
    %273 = arith.divf %271, %272 : vector<2x16xf32>
    %274 = vector.extract_strided_slice %267 {offsets = [0, 16], sizes = [2, 16], strides = [1, 1]} : vector<2x64xf32> to vector<2x16xf32>
    %275 = arith.negf %274 : vector<2x16xf32>
    %276 = math.exp %275 : vector<2x16xf32>
    %cst_78 = arith.constant 1.000000e+00 : f32
    %277 = vector.broadcast %cst_78 : f32 to vector<2x16xf32>
    %278 = arith.addf %277, %276 : vector<2x16xf32>
    %279 = arith.divf %277, %278 : vector<2x16xf32>
    %280 = vector.extract_strided_slice %267 {offsets = [0, 32], sizes = [2, 16], strides = [1, 1]} : vector<2x64xf32> to vector<2x16xf32>
    %281 = math.tanh %280 : vector<2x16xf32>
    %282 = vector.extract_strided_slice %267 {offsets = [0, 48], sizes = [2, 16], strides = [1, 1]} : vector<2x64xf32> to vector<2x16xf32>
    %283 = arith.negf %282 : vector<2x16xf32>
    %284 = math.exp %283 : vector<2x16xf32>
    %cst_79 = arith.constant 1.000000e+00 : f32
    %285 = vector.broadcast %cst_79 : f32 to vector<2x16xf32>
    %286 = arith.addf %285, %284 : vector<2x16xf32>
    %287 = arith.divf %285, %286 : vector<2x16xf32>
    %288 = arith.mulf %279, %255 : vector<2x16xf32>
    %289 = arith.mulf %273, %281 : vector<2x16xf32>
    %290 = arith.addf %288, %289 : vector<2x16xf32>
    %291 = math.tanh %290 : vector<2x16xf32>
    %292 = arith.mulf %287, %291 : vector<2x16xf32>
    %293 = arith.index_cast %c7_i32 : i32 to index
    %c0_80 = arith.constant 0 : index
    %c0_81 = arith.constant 0 : index
    %294 = vector.load %arg17[%293, %c0_80, %c0_81] : memref<8x2x16xf32, #tpu.memory_space<vmem>>, vector<1x2x16xf32>
    %295 = vector.shape_cast %294 : vector<1x2x16xf32> to vector<2x16xf32>
    %296 = vector.shape_cast %292 : vector<2x16xf32> to vector<1x2x16xf32>
    tpu.vector_store %arg17[%293, %c0_80, %c0_81], %296 {strides = array<i32>} : memref<8x2x16xf32, #tpu.memory_space<vmem>>, vector<1x2x16xf32>,
    %c8_i32 = arith.constant 8 : i32
    %c0_i32_82 = arith.constant 0 : i32
    %c7_i32_83 = arith.constant 7 : i32
    %297 = arith.subi %c7_i32_83, %c0_i32_82 : i32
    %298 = arith.index_cast %297 : i32 to index
    %c0_84 = arith.constant 0 : index
    %c0_85 = arith.constant 0 : index
    %299 = vector.load %arg16[%298, %c0_84, %c0_85] : memref<8x2x64xf32, #tpu.memory_space<vmem>>, vector<1x2x64xf32>
    %300 = vector.shape_cast %299 : vector<1x2x64xf32> to vector<2x64xf32>
    %301 = arith.truncf %13 : vector<2x16xf32> to vector<2x16xbf16>
    %cst_86 = arith.constant dense<0.000000e+00> : vector<2x64xf32>
    %302 = tpu.matmul %301, %16, %cst_86 {dimension_numbers = #tpu.dot_dimension_numbers<[1], [0], [0], [1], [0, 0, 1, 1], [], []>} : vector<2x16xbf16>, vector<16x64xbf16>, vector<2x64xf32> -> vector<2x64xf32>
    %303 = arith.addf %300, %302 : vector<2x64xf32>
    %304 = vector.extract_strided_slice %303 {offsets = [0, 0], sizes = [2, 16], strides = [1, 1]} : vector<2x64xf32> to vector<2x16xf32>
    %305 = arith.negf %304 : vector<2x16xf32>
    %306 = math.exp %305 : vector<2x16xf32>
    %cst_87 = arith.constant 1.000000e+00 : f32
    %307 = vector.broadcast %cst_87 : f32 to vector<2x16xf32>
    %308 = arith.addf %307, %306 : vector<2x16xf32>
    %309 = arith.divf %307, %308 : vector<2x16xf32>
    %310 = vector.extract_strided_slice %303 {offsets = [0, 16], sizes = [2, 16], strides = [1, 1]} : vector<2x64xf32> to vector<2x16xf32>
    %311 = arith.negf %310 : vector<2x16xf32>
    %312 = math.exp %311 : vector<2x16xf32>
    %cst_88 = arith.constant 1.000000e+00 : f32
    %313 = vector.broadcast %cst_88 : f32 to vector<2x16xf32>
    %314 = arith.addf %313, %312 : vector<2x16xf32>
    %315 = arith.divf %313, %314 : vector<2x16xf32>
    %316 = vector.extract_strided_slice %303 {offsets = [0, 32], sizes = [2, 16], strides = [1, 1]} : vector<2x64xf32> to vector<2x16xf32>
    %317 = math.tanh %316 : vector<2x16xf32>
    %318 = vector.extract_strided_slice %303 {offsets = [0, 48], sizes = [2, 16], strides = [1, 1]} : vector<2x64xf32> to vector<2x16xf32>
    %319 = arith.negf %318 : vector<2x16xf32>
    %320 = math.exp %319 : vector<2x16xf32>
    %cst_89 = arith.constant 1.000000e+00 : f32
    %321 = vector.broadcast %cst_89 : f32 to vector<2x16xf32>
    %322 = arith.addf %321, %320 : vector<2x16xf32>
    %323 = arith.divf %321, %322 : vector<2x16xf32>
    %324 = arith.mulf %315, %14 : vector<2x16xf32>
    %325 = arith.mulf %309, %317 : vector<2x16xf32>
    %326 = arith.addf %324, %325 : vector<2x16xf32>
    %327 = math.tanh %326 : vector<2x16xf32>
    %328 = arith.mulf %323, %327 : vector<2x16xf32>
    %329 = arith.index_cast %297 : i32 to index
    %c0_90 = arith.constant 0 : index
    %c0_91 = arith.constant 0 : index
    %330 = vector.load %arg18[%329, %c0_90, %c0_91] : memref<8x2x16xf32, #tpu.memory_space<vmem>>, vector<1x2x16xf32>
    %331 = vector.shape_cast %330 : vector<1x2x16xf32> to vector<2x16xf32>
    %332 = vector.shape_cast %328 : vector<2x16xf32> to vector<1x2x16xf32>
    tpu.vector_store %arg18[%329, %c0_90, %c0_91], %332 {strides = array<i32>} : memref<8x2x16xf32, #tpu.memory_space<vmem>>, vector<1x2x16xf32>,
    %c1_i32_92 = arith.constant 1 : i32
    %c7_i32_93 = arith.constant 7 : i32
    %333 = arith.subi %c7_i32_93, %c1_i32_92 : i32
    %334 = arith.index_cast %333 : i32 to index
    %c0_94 = arith.constant 0 : index
    %c0_95 = arith.constant 0 : index
    %335 = vector.load %arg16[%334, %c0_94, %c0_95] : memref<8x2x64xf32, #tpu.memory_space<vmem>>, vector<1x2x64xf32>
    %336 = vector.shape_cast %335 : vector<1x2x64xf32> to vector<2x64xf32>
    %337 = arith.truncf %328 : vector<2x16xf32> to vector<2x16xbf16>
    %cst_96 = arith.constant dense<0.000000e+00> : vector<2x64xf32>
    %338 = tpu.matmul %337, %16, %cst_96 {dimension_numbers = #tpu.dot_dimension_numbers<[1], [0], [0], [1], [0, 0, 1, 1], [], []>} : vector<2x16xbf16>, vector<16x64xbf16>, vector<2x64xf32> -> vector<2x64xf32>
    %339 = arith.addf %336, %338 : vector<2x64xf32>
    %340 = vector.extract_strided_slice %339 {offsets = [0, 0], sizes = [2, 16], strides = [1, 1]} : vector<2x64xf32> to vector<2x16xf32>
    %341 = arith.negf %340 : vector<2x16xf32>
    %342 = math.exp %341 : vector<2x16xf32>
    %cst_97 = arith.constant 1.000000e+00 : f32
    %343 = vector.broadcast %cst_97 : f32 to vector<2x16xf32>
    %344 = arith.addf %343, %342 : vector<2x16xf32>
    %345 = arith.divf %343, %344 : vector<2x16xf32>
    %346 = vector.extract_strided_slice %339 {offsets = [0, 16], sizes = [2, 16], strides = [1, 1]} : vector<2x64xf32> to vector<2x16xf32>
    %347 = arith.negf %346 : vector<2x16xf32>
    %348 = math.exp %347 : vector<2x16xf32>
    %cst_98 = arith.constant 1.000000e+00 : f32
    %349 = vector.broadcast %cst_98 : f32 to vector<2x16xf32>
    %350 = arith.addf %349, %348 : vector<2x16xf32>
    %351 = arith.divf %349, %350 : vector<2x16xf32>
    %352 = vector.extract_strided_slice %339 {offsets = [0, 32], sizes = [2, 16], strides = [1, 1]} : vector<2x64xf32> to vector<2x16xf32>
    %353 = math.tanh %352 : vector<2x16xf32>
    %354 = vector.extract_strided_slice %339 {offsets = [0, 48], sizes = [2, 16], strides = [1, 1]} : vector<2x64xf32> to vector<2x16xf32>
    %355 = arith.negf %354 : vector<2x16xf32>
    %356 = math.exp %355 : vector<2x16xf32>
    %cst_99 = arith.constant 1.000000e+00 : f32
    %357 = vector.broadcast %cst_99 : f32 to vector<2x16xf32>
    %358 = arith.addf %357, %356 : vector<2x16xf32>
    %359 = arith.divf %357, %358 : vector<2x16xf32>
    %360 = arith.mulf %351, %326 : vector<2x16xf32>
    %361 = arith.mulf %345, %353 : vector<2x16xf32>
    %362 = arith.addf %360, %361 : vector<2x16xf32>
    %363 = math.tanh %362 : vector<2x16xf32>
    %364 = arith.mulf %359, %363 : vector<2x16xf32>
    %365 = arith.index_cast %333 : i32 to index
    %c0_100 = arith.constant 0 : index
    %c0_101 = arith.constant 0 : index
    %366 = vector.load %arg18[%365, %c0_100, %c0_101] : memref<8x2x16xf32, #tpu.memory_space<vmem>>, vector<1x2x16xf32>
    %367 = vector.shape_cast %366 : vector<1x2x16xf32> to vector<2x16xf32>
    %368 = vector.shape_cast %364 : vector<2x16xf32> to vector<1x2x16xf32>
    tpu.vector_store %arg18[%365, %c0_100, %c0_101], %368 {strides = array<i32>} : memref<8x2x16xf32, #tpu.memory_space<vmem>>, vector<1x2x16xf32>,
    %c2_i32_102 = arith.constant 2 : i32
    %c7_i32_103 = arith.constant 7 : i32
    %369 = arith.subi %c7_i32_103, %c2_i32_102 : i32
    %370 = arith.index_cast %369 : i32 to index
    %c0_104 = arith.constant 0 : index
    %c0_105 = arith.constant 0 : index
    %371 = vector.load %arg16[%370, %c0_104, %c0_105] : memref<8x2x64xf32, #tpu.memory_space<vmem>>, vector<1x2x64xf32>
    %372 = vector.shape_cast %371 : vector<1x2x64xf32> to vector<2x64xf32>
    %373 = arith.truncf %364 : vector<2x16xf32> to vector<2x16xbf16>
    %cst_106 = arith.constant dense<0.000000e+00> : vector<2x64xf32>
    %374 = tpu.matmul %373, %16, %cst_106 {dimension_numbers = #tpu.dot_dimension_numbers<[1], [0], [0], [1], [0, 0, 1, 1], [], []>} : vector<2x16xbf16>, vector<16x64xbf16>, vector<2x64xf32> -> vector<2x64xf32>
    %375 = arith.addf %372, %374 : vector<2x64xf32>
    %376 = vector.extract_strided_slice %375 {offsets = [0, 0], sizes = [2, 16], strides = [1, 1]} : vector<2x64xf32> to vector<2x16xf32>
    %377 = arith.negf %376 : vector<2x16xf32>
    %378 = math.exp %377 : vector<2x16xf32>
    %cst_107 = arith.constant 1.000000e+00 : f32
    %379 = vector.broadcast %cst_107 : f32 to vector<2x16xf32>
    %380 = arith.addf %379, %378 : vector<2x16xf32>
    %381 = arith.divf %379, %380 : vector<2x16xf32>
    %382 = vector.extract_strided_slice %375 {offsets = [0, 16], sizes = [2, 16], strides = [1, 1]} : vector<2x64xf32> to vector<2x16xf32>
    %383 = arith.negf %382 : vector<2x16xf32>
    %384 = math.exp %383 : vector<2x16xf32>
    %cst_108 = arith.constant 1.000000e+00 : f32
    %385 = vector.broadcast %cst_108 : f32 to vector<2x16xf32>
    %386 = arith.addf %385, %384 : vector<2x16xf32>
    %387 = arith.divf %385, %386 : vector<2x16xf32>
    %388 = vector.extract_strided_slice %375 {offsets = [0, 32], sizes = [2, 16], strides = [1, 1]} : vector<2x64xf32> to vector<2x16xf32>
    %389 = math.tanh %388 : vector<2x16xf32>
    %390 = vector.extract_strided_slice %375 {offsets = [0, 48], sizes = [2, 16], strides = [1, 1]} : vector<2x64xf32> to vector<2x16xf32>
    %391 = arith.negf %390 : vector<2x16xf32>
    %392 = math.exp %391 : vector<2x16xf32>
    %cst_109 = arith.constant 1.000000e+00 : f32
    %393 = vector.broadcast %cst_109 : f32 to vector<2x16xf32>
    %394 = arith.addf %393, %392 : vector<2x16xf32>
    %395 = arith.divf %393, %394 : vector<2x16xf32>
    %396 = arith.mulf %387, %362 : vector<2x16xf32>
    %397 = arith.mulf %381, %389 : vector<2x16xf32>
    %398 = arith.addf %396, %397 : vector<2x16xf32>
    %399 = math.tanh %398 : vector<2x16xf32>
    %400 = arith.mulf %395, %399 : vector<2x16xf32>
    %401 = arith.index_cast %369 : i32 to index
    %c0_110 = arith.constant 0 : index
    %c0_111 = arith.constant 0 : index
    %402 = vector.load %arg18[%401, %c0_110, %c0_111] : memref<8x2x16xf32, #tpu.memory_space<vmem>>, vector<1x2x16xf32>
    %403 = vector.shape_cast %402 : vector<1x2x16xf32> to vector<2x16xf32>
    %404 = vector.shape_cast %400 : vector<2x16xf32> to vector<1x2x16xf32>
    tpu.vector_store %arg18[%401, %c0_110, %c0_111], %404 {strides = array<i32>} : memref<8x2x16xf32, #tpu.memory_space<vmem>>, vector<1x2x16xf32>,
    %c3_i32_112 = arith.constant 3 : i32
    %c7_i32_113 = arith.constant 7 : i32
    %405 = arith.subi %c7_i32_113, %c3_i32_112 : i32
    %406 = arith.index_cast %405 : i32 to index
    %c0_114 = arith.constant 0 : index
    %c0_115 = arith.constant 0 : index
    %407 = vector.load %arg16[%406, %c0_114, %c0_115] : memref<8x2x64xf32, #tpu.memory_space<vmem>>, vector<1x2x64xf32>
    %408 = vector.shape_cast %407 : vector<1x2x64xf32> to vector<2x64xf32>
    %409 = arith.truncf %400 : vector<2x16xf32> to vector<2x16xbf16>
    %cst_116 = arith.constant dense<0.000000e+00> : vector<2x64xf32>
    %410 = tpu.matmul %409, %16, %cst_116 {dimension_numbers = #tpu.dot_dimension_numbers<[1], [0], [0], [1], [0, 0, 1, 1], [], []>} : vector<2x16xbf16>, vector<16x64xbf16>, vector<2x64xf32> -> vector<2x64xf32>
    %411 = arith.addf %408, %410 : vector<2x64xf32>
    %412 = vector.extract_strided_slice %411 {offsets = [0, 0], sizes = [2, 16], strides = [1, 1]} : vector<2x64xf32> to vector<2x16xf32>
    %413 = arith.negf %412 : vector<2x16xf32>
    %414 = math.exp %413 : vector<2x16xf32>
    %cst_117 = arith.constant 1.000000e+00 : f32
    %415 = vector.broadcast %cst_117 : f32 to vector<2x16xf32>
    %416 = arith.addf %415, %414 : vector<2x16xf32>
    %417 = arith.divf %415, %416 : vector<2x16xf32>
    %418 = vector.extract_strided_slice %411 {offsets = [0, 16], sizes = [2, 16], strides = [1, 1]} : vector<2x64xf32> to vector<2x16xf32>
    %419 = arith.negf %418 : vector<2x16xf32>
    %420 = math.exp %419 : vector<2x16xf32>
    %cst_118 = arith.constant 1.000000e+00 : f32
    %421 = vector.broadcast %cst_118 : f32 to vector<2x16xf32>
    %422 = arith.addf %421, %420 : vector<2x16xf32>
    %423 = arith.divf %421, %422 : vector<2x16xf32>
    %424 = vector.extract_strided_slice %411 {offsets = [0, 32], sizes = [2, 16], strides = [1, 1]} : vector<2x64xf32> to vector<2x16xf32>
    %425 = math.tanh %424 : vector<2x16xf32>
    %426 = vector.extract_strided_slice %411 {offsets = [0, 48], sizes = [2, 16], strides = [1, 1]} : vector<2x64xf32> to vector<2x16xf32>
    %427 = arith.negf %426 : vector<2x16xf32>
    %428 = math.exp %427 : vector<2x16xf32>
    %cst_119 = arith.constant 1.000000e+00 : f32
    %429 = vector.broadcast %cst_119 : f32 to vector<2x16xf32>
    %430 = arith.addf %429, %428 : vector<2x16xf32>
    %431 = arith.divf %429, %430 : vector<2x16xf32>
    %432 = arith.mulf %423, %398 : vector<2x16xf32>
    %433 = arith.mulf %417, %425 : vector<2x16xf32>
    %434 = arith.addf %432, %433 : vector<2x16xf32>
    %435 = math.tanh %434 : vector<2x16xf32>
    %436 = arith.mulf %431, %435 : vector<2x16xf32>
    %437 = arith.index_cast %405 : i32 to index
    %c0_120 = arith.constant 0 : index
    %c0_121 = arith.constant 0 : index
    %438 = vector.load %arg18[%437, %c0_120, %c0_121] : memref<8x2x16xf32, #tpu.memory_space<vmem>>, vector<1x2x16xf32>
    %439 = vector.shape_cast %438 : vector<1x2x16xf32> to vector<2x16xf32>
    %440 = vector.shape_cast %436 : vector<2x16xf32> to vector<1x2x16xf32>
    tpu.vector_store %arg18[%437, %c0_120, %c0_121], %440 {strides = array<i32>} : memref<8x2x16xf32, #tpu.memory_space<vmem>>, vector<1x2x16xf32>,
    %c4_i32_122 = arith.constant 4 : i32
    %c7_i32_123 = arith.constant 7 : i32
    %441 = arith.subi %c7_i32_123, %c4_i32_122 : i32
    %442 = arith.index_cast %441 : i32 to index
    %c0_124 = arith.constant 0 : index
    %c0_125 = arith.constant 0 : index
    %443 = vector.load %arg16[%442, %c0_124, %c0_125] : memref<8x2x64xf32, #tpu.memory_space<vmem>>, vector<1x2x64xf32>
    %444 = vector.shape_cast %443 : vector<1x2x64xf32> to vector<2x64xf32>
    %445 = arith.truncf %436 : vector<2x16xf32> to vector<2x16xbf16>
    %cst_126 = arith.constant dense<0.000000e+00> : vector<2x64xf32>
    %446 = tpu.matmul %445, %16, %cst_126 {dimension_numbers = #tpu.dot_dimension_numbers<[1], [0], [0], [1], [0, 0, 1, 1], [], []>} : vector<2x16xbf16>, vector<16x64xbf16>, vector<2x64xf32> -> vector<2x64xf32>
    %447 = arith.addf %444, %446 : vector<2x64xf32>
    %448 = vector.extract_strided_slice %447 {offsets = [0, 0], sizes = [2, 16], strides = [1, 1]} : vector<2x64xf32> to vector<2x16xf32>
    %449 = arith.negf %448 : vector<2x16xf32>
    %450 = math.exp %449 : vector<2x16xf32>
    %cst_127 = arith.constant 1.000000e+00 : f32
    %451 = vector.broadcast %cst_127 : f32 to vector<2x16xf32>
    %452 = arith.addf %451, %450 : vector<2x16xf32>
    %453 = arith.divf %451, %452 : vector<2x16xf32>
    %454 = vector.extract_strided_slice %447 {offsets = [0, 16], sizes = [2, 16], strides = [1, 1]} : vector<2x64xf32> to vector<2x16xf32>
    %455 = arith.negf %454 : vector<2x16xf32>
    %456 = math.exp %455 : vector<2x16xf32>
    %cst_128 = arith.constant 1.000000e+00 : f32
    %457 = vector.broadcast %cst_128 : f32 to vector<2x16xf32>
    %458 = arith.addf %457, %456 : vector<2x16xf32>
    %459 = arith.divf %457, %458 : vector<2x16xf32>
    %460 = vector.extract_strided_slice %447 {offsets = [0, 32], sizes = [2, 16], strides = [1, 1]} : vector<2x64xf32> to vector<2x16xf32>
    %461 = math.tanh %460 : vector<2x16xf32>
    %462 = vector.extract_strided_slice %447 {offsets = [0, 48], sizes = [2, 16], strides = [1, 1]} : vector<2x64xf32> to vector<2x16xf32>
    %463 = arith.negf %462 : vector<2x16xf32>
    %464 = math.exp %463 : vector<2x16xf32>
    %cst_129 = arith.constant 1.000000e+00 : f32
    %465 = vector.broadcast %cst_129 : f32 to vector<2x16xf32>
    %466 = arith.addf %465, %464 : vector<2x16xf32>
    %467 = arith.divf %465, %466 : vector<2x16xf32>
    %468 = arith.mulf %459, %434 : vector<2x16xf32>
    %469 = arith.mulf %453, %461 : vector<2x16xf32>
    %470 = arith.addf %468, %469 : vector<2x16xf32>
    %471 = math.tanh %470 : vector<2x16xf32>
    %472 = arith.mulf %467, %471 : vector<2x16xf32>
    %473 = arith.index_cast %441 : i32 to index
    %c0_130 = arith.constant 0 : index
    %c0_131 = arith.constant 0 : index
    %474 = vector.load %arg18[%473, %c0_130, %c0_131] : memref<8x2x16xf32, #tpu.memory_space<vmem>>, vector<1x2x16xf32>
    %475 = vector.shape_cast %474 : vector<1x2x16xf32> to vector<2x16xf32>
    %476 = vector.shape_cast %472 : vector<2x16xf32> to vector<1x2x16xf32>
    tpu.vector_store %arg18[%473, %c0_130, %c0_131], %476 {strides = array<i32>} : memref<8x2x16xf32, #tpu.memory_space<vmem>>, vector<1x2x16xf32>,
    %c5_i32_132 = arith.constant 5 : i32
    %c7_i32_133 = arith.constant 7 : i32
    %477 = arith.subi %c7_i32_133, %c5_i32_132 : i32
    %478 = arith.index_cast %477 : i32 to index
    %c0_134 = arith.constant 0 : index
    %c0_135 = arith.constant 0 : index
    %479 = vector.load %arg16[%478, %c0_134, %c0_135] : memref<8x2x64xf32, #tpu.memory_space<vmem>>, vector<1x2x64xf32>
    %480 = vector.shape_cast %479 : vector<1x2x64xf32> to vector<2x64xf32>
    %481 = arith.truncf %472 : vector<2x16xf32> to vector<2x16xbf16>
    %cst_136 = arith.constant dense<0.000000e+00> : vector<2x64xf32>
    %482 = tpu.matmul %481, %16, %cst_136 {dimension_numbers = #tpu.dot_dimension_numbers<[1], [0], [0], [1], [0, 0, 1, 1], [], []>} : vector<2x16xbf16>, vector<16x64xbf16>, vector<2x64xf32> -> vector<2x64xf32>
    %483 = arith.addf %480, %482 : vector<2x64xf32>
    %484 = vector.extract_strided_slice %483 {offsets = [0, 0], sizes = [2, 16], strides = [1, 1]} : vector<2x64xf32> to vector<2x16xf32>
    %485 = arith.negf %484 : vector<2x16xf32>
    %486 = math.exp %485 : vector<2x16xf32>
    %cst_137 = arith.constant 1.000000e+00 : f32
    %487 = vector.broadcast %cst_137 : f32 to vector<2x16xf32>
    %488 = arith.addf %487, %486 : vector<2x16xf32>
    %489 = arith.divf %487, %488 : vector<2x16xf32>
    %490 = vector.extract_strided_slice %483 {offsets = [0, 16], sizes = [2, 16], strides = [1, 1]} : vector<2x64xf32> to vector<2x16xf32>
    %491 = arith.negf %490 : vector<2x16xf32>
    %492 = math.exp %491 : vector<2x16xf32>
    %cst_138 = arith.constant 1.000000e+00 : f32
    %493 = vector.broadcast %cst_138 : f32 to vector<2x16xf32>
    %494 = arith.addf %493, %492 : vector<2x16xf32>
    %495 = arith.divf %493, %494 : vector<2x16xf32>
    %496 = vector.extract_strided_slice %483 {offsets = [0, 32], sizes = [2, 16], strides = [1, 1]} : vector<2x64xf32> to vector<2x16xf32>
    %497 = math.tanh %496 : vector<2x16xf32>
    %498 = vector.extract_strided_slice %483 {offsets = [0, 48], sizes = [2, 16], strides = [1, 1]} : vector<2x64xf32> to vector<2x16xf32>
    %499 = arith.negf %498 : vector<2x16xf32>
    %500 = math.exp %499 : vector<2x16xf32>
    %cst_139 = arith.constant 1.000000e+00 : f32
    %501 = vector.broadcast %cst_139 : f32 to vector<2x16xf32>
    %502 = arith.addf %501, %500 : vector<2x16xf32>
    %503 = arith.divf %501, %502 : vector<2x16xf32>
    %504 = arith.mulf %495, %470 : vector<2x16xf32>
    %505 = arith.mulf %489, %497 : vector<2x16xf32>
    %506 = arith.addf %504, %505 : vector<2x16xf32>
    %507 = math.tanh %506 : vector<2x16xf32>
    %508 = arith.mulf %503, %507 : vector<2x16xf32>
    %509 = arith.index_cast %477 : i32 to index
    %c0_140 = arith.constant 0 : index
    %c0_141 = arith.constant 0 : index
    %510 = vector.load %arg18[%509, %c0_140, %c0_141] : memref<8x2x16xf32, #tpu.memory_space<vmem>>, vector<1x2x16xf32>
    %511 = vector.shape_cast %510 : vector<1x2x16xf32> to vector<2x16xf32>
    %512 = vector.shape_cast %508 : vector<2x16xf32> to vector<1x2x16xf32>
    tpu.vector_store %arg18[%509, %c0_140, %c0_141], %512 {strides = array<i32>} : memref<8x2x16xf32, #tpu.memory_space<vmem>>, vector<1x2x16xf32>,
    %c6_i32_142 = arith.constant 6 : i32
    %c7_i32_143 = arith.constant 7 : i32
    %513 = arith.subi %c7_i32_143, %c6_i32_142 : i32
    %514 = arith.index_cast %513 : i32 to index
    %c0_144 = arith.constant 0 : index
    %c0_145 = arith.constant 0 : index
    %515 = vector.load %arg16[%514, %c0_144, %c0_145] : memref<8x2x64xf32, #tpu.memory_space<vmem>>, vector<1x2x64xf32>
    %516 = vector.shape_cast %515 : vector<1x2x64xf32> to vector<2x64xf32>
    %517 = arith.truncf %508 : vector<2x16xf32> to vector<2x16xbf16>
    %cst_146 = arith.constant dense<0.000000e+00> : vector<2x64xf32>
    %518 = tpu.matmul %517, %16, %cst_146 {dimension_numbers = #tpu.dot_dimension_numbers<[1], [0], [0], [1], [0, 0, 1, 1], [], []>} : vector<2x16xbf16>, vector<16x64xbf16>, vector<2x64xf32> -> vector<2x64xf32>
    %519 = arith.addf %516, %518 : vector<2x64xf32>
    %520 = vector.extract_strided_slice %519 {offsets = [0, 0], sizes = [2, 16], strides = [1, 1]} : vector<2x64xf32> to vector<2x16xf32>
    %521 = arith.negf %520 : vector<2x16xf32>
    %522 = math.exp %521 : vector<2x16xf32>
    %cst_147 = arith.constant 1.000000e+00 : f32
    %523 = vector.broadcast %cst_147 : f32 to vector<2x16xf32>
    %524 = arith.addf %523, %522 : vector<2x16xf32>
    %525 = arith.divf %523, %524 : vector<2x16xf32>
    %526 = vector.extract_strided_slice %519 {offsets = [0, 16], sizes = [2, 16], strides = [1, 1]} : vector<2x64xf32> to vector<2x16xf32>
    %527 = arith.negf %526 : vector<2x16xf32>
    %528 = math.exp %527 : vector<2x16xf32>
    %cst_148 = arith.constant 1.000000e+00 : f32
    %529 = vector.broadcast %cst_148 : f32 to vector<2x16xf32>
    %530 = arith.addf %529, %528 : vector<2x16xf32>
    %531 = arith.divf %529, %530 : vector<2x16xf32>
    %532 = vector.extract_strided_slice %519 {offsets = [0, 32], sizes = [2, 16], strides = [1, 1]} : vector<2x64xf32> to vector<2x16xf32>
    %533 = math.tanh %532 : vector<2x16xf32>
    %534 = vector.extract_strided_slice %519 {offsets = [0, 48], sizes = [2, 16], strides = [1, 1]} : vector<2x64xf32> to vector<2x16xf32>
    %535 = arith.negf %534 : vector<2x16xf32>
    %536 = math.exp %535 : vector<2x16xf32>
    %cst_149 = arith.constant 1.000000e+00 : f32
    %537 = vector.broadcast %cst_149 : f32 to vector<2x16xf32>
    %538 = arith.addf %537, %536 : vector<2x16xf32>
    %539 = arith.divf %537, %538 : vector<2x16xf32>
    %540 = arith.mulf %531, %506 : vector<2x16xf32>
    %541 = arith.mulf %525, %533 : vector<2x16xf32>
    %542 = arith.addf %540, %541 : vector<2x16xf32>
    %543 = math.tanh %542 : vector<2x16xf32>
    %544 = arith.mulf %539, %543 : vector<2x16xf32>
    %545 = arith.index_cast %513 : i32 to index
    %c0_150 = arith.constant 0 : index
    %c0_151 = arith.constant 0 : index
    %546 = vector.load %arg18[%545, %c0_150, %c0_151] : memref<8x2x16xf32, #tpu.memory_space<vmem>>, vector<1x2x16xf32>
    %547 = vector.shape_cast %546 : vector<1x2x16xf32> to vector<2x16xf32>
    %548 = vector.shape_cast %544 : vector<2x16xf32> to vector<1x2x16xf32>
    tpu.vector_store %arg18[%545, %c0_150, %c0_151], %548 {strides = array<i32>} : memref<8x2x16xf32, #tpu.memory_space<vmem>>, vector<1x2x16xf32>,
    %c7_i32_152 = arith.constant 7 : i32
    %c7_i32_153 = arith.constant 7 : i32
    %549 = arith.subi %c7_i32_153, %c7_i32_152 : i32
    %550 = arith.index_cast %549 : i32 to index
    %c0_154 = arith.constant 0 : index
    %c0_155 = arith.constant 0 : index
    %551 = vector.load %arg16[%550, %c0_154, %c0_155] : memref<8x2x64xf32, #tpu.memory_space<vmem>>, vector<1x2x64xf32>
    %552 = vector.shape_cast %551 : vector<1x2x64xf32> to vector<2x64xf32>
    %553 = arith.truncf %544 : vector<2x16xf32> to vector<2x16xbf16>
    %cst_156 = arith.constant dense<0.000000e+00> : vector<2x64xf32>
    %554 = tpu.matmul %553, %16, %cst_156 {dimension_numbers = #tpu.dot_dimension_numbers<[1], [0], [0], [1], [0, 0, 1, 1], [], []>} : vector<2x16xbf16>, vector<16x64xbf16>, vector<2x64xf32> -> vector<2x64xf32>
    %555 = arith.addf %552, %554 : vector<2x64xf32>
    %556 = vector.extract_strided_slice %555 {offsets = [0, 0], sizes = [2, 16], strides = [1, 1]} : vector<2x64xf32> to vector<2x16xf32>
    %557 = arith.negf %556 : vector<2x16xf32>
    %558 = math.exp %557 : vector<2x16xf32>
    %cst_157 = arith.constant 1.000000e+00 : f32
    %559 = vector.broadcast %cst_157 : f32 to vector<2x16xf32>
    %560 = arith.addf %559, %558 : vector<2x16xf32>
    %561 = arith.divf %559, %560 : vector<2x16xf32>
    %562 = vector.extract_strided_slice %555 {offsets = [0, 16], sizes = [2, 16], strides = [1, 1]} : vector<2x64xf32> to vector<2x16xf32>
    %563 = arith.negf %562 : vector<2x16xf32>
    %564 = math.exp %563 : vector<2x16xf32>
    %cst_158 = arith.constant 1.000000e+00 : f32
    %565 = vector.broadcast %cst_158 : f32 to vector<2x16xf32>
    %566 = arith.addf %565, %564 : vector<2x16xf32>
    %567 = arith.divf %565, %566 : vector<2x16xf32>
    %568 = vector.extract_strided_slice %555 {offsets = [0, 32], sizes = [2, 16], strides = [1, 1]} : vector<2x64xf32> to vector<2x16xf32>
    %569 = math.tanh %568 : vector<2x16xf32>
    %570 = vector.extract_strided_slice %555 {offsets = [0, 48], sizes = [2, 16], strides = [1, 1]} : vector<2x64xf32> to vector<2x16xf32>
    %571 = arith.negf %570 : vector<2x16xf32>
    %572 = math.exp %571 : vector<2x16xf32>
    %cst_159 = arith.constant 1.000000e+00 : f32
    %573 = vector.broadcast %cst_159 : f32 to vector<2x16xf32>
    %574 = arith.addf %573, %572 : vector<2x16xf32>
    %575 = arith.divf %573, %574 : vector<2x16xf32>
    %576 = arith.mulf %567, %542 : vector<2x16xf32>
    %577 = arith.mulf %561, %569 : vector<2x16xf32>
    %578 = arith.addf %576, %577 : vector<2x16xf32>
    %579 = math.tanh %578 : vector<2x16xf32>
    %580 = arith.mulf %575, %579 : vector<2x16xf32>
    %581 = arith.index_cast %549 : i32 to index
    %c0_160 = arith.constant 0 : index
    %c0_161 = arith.constant 0 : index
    %582 = vector.load %arg18[%581, %c0_160, %c0_161] : memref<8x2x16xf32, #tpu.memory_space<vmem>>, vector<1x2x16xf32>
    %583 = vector.shape_cast %582 : vector<1x2x16xf32> to vector<2x16xf32>
    %584 = vector.shape_cast %580 : vector<2x16xf32> to vector<1x2x16xf32>
    tpu.vector_store %arg18[%581, %c0_160, %c0_161], %584 {strides = array<i32>} : memref<8x2x16xf32, #tpu.memory_space<vmem>>, vector<1x2x16xf32>,
    %c8_i32_162 = arith.constant 8 : i32
    %c0_163 = arith.constant 0 : index
    %c0_164 = arith.constant 0 : index
    %c0_165 = arith.constant 0 : index
    %585 = vector.load %arg17[%c0_163, %c0_164, %c0_165] : memref<8x2x16xf32, #tpu.memory_space<vmem>>, vector<8x2x16xf32>
    %c0_166 = arith.constant 0 : index
    %c0_167 = arith.constant 0 : index
    %c0_168 = arith.constant 0 : index
    %586 = vector.load %arg18[%c0_166, %c0_167, %c0_168] : memref<8x2x16xf32, #tpu.memory_space<vmem>>, vector<8x2x16xf32>
    %cst_169 = arith.constant dense<0.000000e+00> : vector<2x16xf32>
    %587 = vector.multi_reduction <add>, %585, %cst_169 [0] : vector<8x2x16xf32> to vector<2x16xf32>
    %cst_170 = arith.constant dense<0.000000e+00> : vector<2x16xf32>
    %588 = vector.multi_reduction <add>, %586, %cst_170 [0] : vector<8x2x16xf32> to vector<2x16xf32>
    %cst_171 = arith.constant 0.000000e+00 : f32
    %589 = vector.broadcast %cst_171 : f32 to vector<2x16xf32>
    %590 = vector.extract_strided_slice %585 {offsets = [7, 0, 0], sizes = [1, 2, 16], strides = [1, 1, 1]} : vector<8x2x16xf32> to vector<1x2x16xf32>
    %cst_172 = arith.constant dense<0.000000e+00> : vector<2x16xf32>
    %591 = vector.multi_reduction <add>, %590, %cst_172 [0] : vector<1x2x16xf32> to vector<2x16xf32>
    %592 = arith.subf %587, %591 : vector<2x16xf32>
    %593 = vector.extract_strided_slice %586 {offsets = [7, 0, 0], sizes = [1, 2, 16], strides = [1, 1, 1]} : vector<8x2x16xf32> to vector<1x2x16xf32>
    %cst_173 = arith.constant dense<0.000000e+00> : vector<2x16xf32>
    %594 = vector.multi_reduction <add>, %593, %cst_173 [0] : vector<1x2x16xf32> to vector<2x16xf32>
    %595 = arith.subf %588, %594 : vector<2x16xf32>
    %596 = tpu.concatenate %592, %595 in 1 : vector<2x16xf32>, vector<2x16xf32> -> vector<2x32xf32>
    %597 = arith.truncf %596 : vector<2x32xf32> to vector<2x32xbf16>
    %c0_174 = arith.constant 0 : index
    %c0_175 = arith.constant 0 : index
    %c0_176 = arith.constant 0 : index
    %598 = vector.load %arg6[%c0_174, %c0_175, %c0_176] : memref<3x32x16xbf16, #tpu.memory_space<vmem>>, vector<1x32x16xbf16>
    %599 = vector.shape_cast %598 : vector<1x32x16xbf16> to vector<32x16xbf16>
    %cst_177 = arith.constant dense<0.000000e+00> : vector<2x16xf32>
    %600 = tpu.matmul %597, %599, %cst_177 {dimension_numbers = #tpu.dot_dimension_numbers<[1], [0], [0], [1], [0, 0, 1, 1], [], []>} : vector<2x32xbf16>, vector<32x16xbf16>, vector<2x16xf32> -> vector<2x16xf32>
    %601 = arith.addf %589, %600 : vector<2x16xf32>
    %602 = tpu.concatenate %587, %588 in 1 : vector<2x16xf32>, vector<2x16xf32> -> vector<2x32xf32>
    %603 = arith.truncf %602 : vector<2x32xf32> to vector<2x32xbf16>
    %c1 = arith.constant 1 : index
    %c0_178 = arith.constant 0 : index
    %c0_179 = arith.constant 0 : index
    %604 = vector.load %arg6[%c1, %c0_178, %c0_179] : memref<3x32x16xbf16, #tpu.memory_space<vmem>>, vector<1x32x16xbf16>
    %605 = vector.shape_cast %604 : vector<1x32x16xbf16> to vector<32x16xbf16>
    %cst_180 = arith.constant dense<0.000000e+00> : vector<2x16xf32>
    %606 = tpu.matmul %603, %605, %cst_180 {dimension_numbers = #tpu.dot_dimension_numbers<[1], [0], [0], [1], [0, 0, 1, 1], [], []>} : vector<2x32xbf16>, vector<32x16xbf16>, vector<2x16xf32> -> vector<2x16xf32>
    %607 = arith.addf %601, %606 : vector<2x16xf32>
    %608 = vector.extract_strided_slice %585 {offsets = [0, 0, 0], sizes = [1, 2, 16], strides = [1, 1, 1]} : vector<8x2x16xf32> to vector<1x2x16xf32>
    %cst_181 = arith.constant dense<0.000000e+00> : vector<2x16xf32>
    %609 = vector.multi_reduction <add>, %608, %cst_181 [0] : vector<1x2x16xf32> to vector<2x16xf32>
    %610 = arith.subf %587, %609 : vector<2x16xf32>
    %611 = vector.extract_strided_slice %586 {offsets = [0, 0, 0], sizes = [1, 2, 16], strides = [1, 1, 1]} : vector<8x2x16xf32> to vector<1x2x16xf32>
    %cst_182 = arith.constant dense<0.000000e+00> : vector<2x16xf32>
    %612 = vector.multi_reduction <add>, %611, %cst_182 [0] : vector<1x2x16xf32> to vector<2x16xf32>
    %613 = arith.subf %588, %612 : vector<2x16xf32>
    %614 = tpu.concatenate %610, %613 in 1 : vector<2x16xf32>, vector<2x16xf32> -> vector<2x32xf32>
    %615 = arith.truncf %614 : vector<2x32xf32> to vector<2x32xbf16>
    %c2 = arith.constant 2 : index
    %c0_183 = arith.constant 0 : index
    %c0_184 = arith.constant 0 : index
    %616 = vector.load %arg6[%c2, %c0_183, %c0_184] : memref<3x32x16xbf16, #tpu.memory_space<vmem>>, vector<1x32x16xbf16>
    %617 = vector.shape_cast %616 : vector<1x32x16xbf16> to vector<32x16xbf16>
    %cst_185 = arith.constant dense<0.000000e+00> : vector<2x16xf32>
    %618 = tpu.matmul %615, %617, %cst_185 {dimension_numbers = #tpu.dot_dimension_numbers<[1], [0], [0], [1], [0, 0, 1, 1], [], []>} : vector<2x32xbf16>, vector<32x16xbf16>, vector<2x16xf32> -> vector<2x16xf32>
    %619 = arith.addf %607, %618 : vector<2x16xf32>
    %c0_186 = arith.constant 0 : index
    %c0_187 = arith.constant 0 : index
    %620 = vector.load %arg7[%c0_186, %c0_187] : memref<1x16xf32, #tpu.memory_space<vmem>>, vector<1x16xf32>
    %621 = vector.broadcast %620 : vector<1x16xf32> to vector<2x16xf32>
    %622 = arith.addf %619, %621 : vector<2x16xf32>
    %623 = arith.truncf %622 : vector<2x16xf32> to vector<2x16xbf16>
    %c0_188 = arith.constant 0 : index
    %c0_189 = arith.constant 0 : index
    %624 = vector.load %arg8[%c0_188, %c0_189] : memref<16x32xbf16, #tpu.memory_space<vmem>>, vector<16x32xbf16>
    %cst_190 = arith.constant dense<0.000000e+00> : vector<2x32xf32>
    %625 = tpu.matmul %623, %624, %cst_190 {dimension_numbers = #tpu.dot_dimension_numbers<[1], [0], [0], [1], [0, 0, 1, 1], [], []>} : vector<2x16xbf16>, vector<16x32xbf16>, vector<2x32xf32> -> vector<2x32xf32>
    %c0_191 = arith.constant 0 : index
    %c0_192 = arith.constant 0 : index
    %626 = vector.load %arg9[%c0_191, %c0_192] : memref<1x32xf32, #tpu.memory_space<vmem>>, vector<1x32xf32>
    %627 = vector.broadcast %626 : vector<1x32xf32> to vector<2x32xf32>
    %628 = arith.addf %625, %627 : vector<2x32xf32>
    %cst_193 = arith.constant 0.000000e+00 : f32
    %629 = vector.broadcast %cst_193 : f32 to vector<2x32xf32>
    %630 = arith.maximumf %628, %629 : vector<2x32xf32>
    %631 = arith.truncf %630 : vector<2x32xf32> to vector<2x32xbf16>
    %c0_194 = arith.constant 0 : index
    %c0_195 = arith.constant 0 : index
    %632 = vector.load %arg10[%c0_194, %c0_195] : memref<32x32xbf16, #tpu.memory_space<vmem>>, vector<32x32xbf16>
    %cst_196 = arith.constant dense<0.000000e+00> : vector<2x32xf32>
    %633 = tpu.matmul %631, %632, %cst_196 {dimension_numbers = #tpu.dot_dimension_numbers<[1], [0], [0], [1], [0, 0, 1, 1], [], []>} : vector<2x32xbf16>, vector<32x32xbf16>, vector<2x32xf32> -> vector<2x32xf32>
    %c0_197 = arith.constant 0 : index
    %c0_198 = arith.constant 0 : index
    %634 = vector.load %arg11[%c0_197, %c0_198] : memref<1x32xf32, #tpu.memory_space<vmem>>, vector<1x32xf32>
    %635 = vector.broadcast %634 : vector<1x32xf32> to vector<2x32xf32>
    %636 = arith.addf %633, %635 : vector<2x32xf32>
    %cst_199 = arith.constant 0.000000e+00 : f32
    %637 = vector.broadcast %cst_199 : f32 to vector<2x32xf32>
    %638 = arith.maximumf %636, %637 : vector<2x32xf32>
    %639 = arith.truncf %638 : vector<2x32xf32> to vector<2x32xbf16>
    %c0_200 = arith.constant 0 : index
    %c0_201 = arith.constant 0 : index
    %640 = vector.load %arg12[%c0_200, %c0_201] : memref<32x128xbf16, #tpu.memory_space<vmem>>, vector<32x128xbf16>
    %cst_202 = arith.constant dense<0.000000e+00> : vector<2x128xf32>
    %641 = tpu.matmul %639, %640, %cst_202 {dimension_numbers = #tpu.dot_dimension_numbers<[1], [0], [0], [1], [0, 0, 1, 1], [], []>} : vector<2x32xbf16>, vector<32x128xbf16>, vector<2x128xf32> -> vector<2x128xf32>
    %c0_203 = arith.constant 0 : index
    %c0_204 = arith.constant 0 : index
    %642 = vector.load %arg13[%c0_203, %c0_204] : memref<1x128xf32, #tpu.memory_space<vmem>>, vector<1x128xf32>
    %643 = vector.broadcast %642 : vector<1x128xf32> to vector<2x128xf32>
    %644 = arith.addf %641, %643 : vector<2x128xf32>
    %645 = tpu.iota {dimensions = array<i32: 1>} : vector<2x128xi32>
    %c4_i32_205 = arith.constant 4 : i32
    %646 = vector.broadcast %c4_i32_205 : i32 to vector<2x128xi32>
    %647 = arith.cmpi slt, %645, %646 : vector<2x128xi32>
    %cst_206 = arith.constant 0xFF800000 : f32
    %648 = vector.broadcast %cst_206 : f32 to vector<2x128xf32>
    %649 = arith.select %647, %644, %648 : vector<2x128xi1>, vector<2x128xf32>
    %cst_207 = arith.constant dense<0xFF800000> : vector<2xf32>
    %650 = vector.multi_reduction <maximumf>, %649, %cst_207 [1] : vector<2x128xf32> to vector<2xf32>
    %651 = vector.shape_cast %650 : vector<2xf32> to vector<2x1xf32>
    %652 = vector.broadcast %651 : vector<2x1xf32> to vector<2x128xf32>
    %653 = arith.subf %644, %652 : vector<2x128xf32>
    %654 = math.exp %653 : vector<2x128xf32>
    %cst_208 = arith.constant 0.000000e+00 : f32
    %655 = vector.broadcast %cst_208 : f32 to vector<2x128xf32>
    %656 = arith.select %647, %654, %655 : vector<2x128xi1>, vector<2x128xf32>
    %cst_209 = arith.constant dense<0.000000e+00> : vector<2xf32>
    %657 = vector.multi_reduction <add>, %656, %cst_209 [1] : vector<2x128xf32> to vector<2xf32>
    %658 = vector.shape_cast %657 : vector<2xf32> to vector<2x1xf32>
    %659 = vector.broadcast %658 : vector<2x1xf32> to vector<2x128xf32>
    %660 = arith.divf %656, %659 : vector<2x128xf32>
    %c0_210 = arith.constant 0 : index
    %c0_211 = arith.constant 0 : index
    %661 = vector.load %arg14[%c0_210, %c0_211] : memref<2x128xf32, #tpu.memory_space<vmem>>, vector<2x128xf32>
    tpu.vector_store %arg14[%c0_210, %c0_211], %660 {strides = array<i32>} : memref<2x128xf32, #tpu.memory_space<vmem>>, vector<2x128xf32>,
    return
  }
  func.func @transform_0(%arg0: i32) -> (i32, i32, i32) {
    %c0_i32 = arith.constant 0 : i32
    %c0_i32_0 = arith.constant 0 : i32
    %c0_i32_1 = arith.constant 0 : i32
    return %c0_i32, %arg0, %c0_i32_0 : i32, i32, i32
  }
  func.func @transform_1(%arg0: i32) -> (i32, i32) {
    %c0_i32 = arith.constant 0 : i32
    %c0_i32_0 = arith.constant 0 : i32
    %c0_i32_1 = arith.constant 0 : i32
    return %c0_i32, %c0_i32_0 : i32, i32
  }
  func.func @transform_2(%arg0: i32) -> (i32, i32) {
    %c0_i32 = arith.constant 0 : i32
    %c0_i32_0 = arith.constant 0 : i32
    %c0_i32_1 = arith.constant 0 : i32
    return %c0_i32, %c0_i32_0 : i32, i32
  }
  func.func @transform_3(%arg0: i32) -> (i32, i32) {
    %c0_i32 = arith.constant 0 : i32
    %c0_i32_0 = arith.constant 0 : i32
    %c0_i32_1 = arith.constant 0 : i32
    return %c0_i32, %c0_i32_0 : i32, i32
  }
  func.func @transform_4(%arg0: i32) -> (i32, i32) {
    %c0_i32 = arith.constant 0 : i32
    %c0_i32_0 = arith.constant 0 : i32
    %c0_i32_1 = arith.constant 0 : i32
    return %c0_i32, %c0_i32_0 : i32, i32
  }
  func.func @transform_5(%arg0: i32) -> (i32, i32, i32) {
    %c0_i32 = arith.constant 0 : i32
    %c0_i32_0 = arith.constant 0 : i32
    %c0_i32_1 = arith.constant 0 : i32
    %c0_i32_2 = arith.constant 0 : i32
    return %c0_i32, %c0_i32_0, %c0_i32_1 : i32, i32, i32
  }
  func.func @transform_6(%arg0: i32) -> (i32, i32) {
    %c0_i32 = arith.constant 0 : i32
    %c0_i32_0 = arith.constant 0 : i32
    %c0_i32_1 = arith.constant 0 : i32
    return %c0_i32, %c0_i32_0 : i32, i32
  }
  func.func @transform_7(%arg0: i32) -> (i32, i32) {
    %c0_i32 = arith.constant 0 : i32
    %c0_i32_0 = arith.constant 0 : i32
    %c0_i32_1 = arith.constant 0 : i32
    return %c0_i32, %c0_i32_0 : i32, i32
  }
  func.func @transform_8(%arg0: i32) -> (i32, i32) {
    %c0_i32 = arith.constant 0 : i32
    %c0_i32_0 = arith.constant 0 : i32
    %c0_i32_1 = arith.constant 0 : i32
    return %c0_i32, %c0_i32_0 : i32, i32
  }
  func.func @transform_9(%arg0: i32) -> (i32, i32) {
    %c0_i32 = arith.constant 0 : i32
    %c0_i32_0 = arith.constant 0 : i32
    %c0_i32_1 = arith.constant 0 : i32
    return %c0_i32, %c0_i32_0 : i32, i32
  }
  func.func @transform_10(%arg0: i32) -> (i32, i32) {
    %c0_i32 = arith.constant 0 : i32
    %c0_i32_0 = arith.constant 0 : i32
    %c0_i32_1 = arith.constant 0 : i32
    return %c0_i32, %c0_i32_0 : i32, i32
  }
  func.func @transform_11(%arg0: i32) -> (i32, i32) {
    %c0_i32 = arith.constant 0 : i32
    %c0_i32_0 = arith.constant 0 : i32
    %c0_i32_1 = arith.constant 0 : i32
    return %c0_i32, %c0_i32_0 : i32, i32
  }
  func.func @transform_12(%arg0: i32) -> (i32, i32) {
    %c0_i32 = arith.constant 0 : i32
    %c0_i32_0 = arith.constant 0 : i32
    %c0_i32_1 = arith.constant 0 : i32
    return %c0_i32, %c0_i32_0 : i32, i32
  }
  func.func @transform_13(%arg0: i32) -> (i32, i32) {
    %c0_i32 = arith.constant 0 : i32
    %c0_i32_0 = arith.constant 0 : i32
    return %arg0, %c0_i32 : i32, i32
  }
}

</mosaic_0001>

<bundles_post_ra>
// kernel: tpu_custom_call.1
= control target key start
LH: loop header
LB: loop body
LE: loop exit
PB: predicated region body
PF: predicated region fallthrough
CT: control target
= control target key end

     0   :  { %v2537_v1 = vmov 0.0   ;;  %v80_v3 = vlaneseq  ;;  %vm2538_vm0 = vmmov 0   ;;  %v2539_v12 = vmov 1966171168   ;;  %s3115_s0 = inlined_call_operand.vmem [shape: bf16[8,2,32], index: 0, kind: input, shape index: {}]   ;;  %s3116_s1 = inlined_call_operand.vmem [shape: bf16[32,128], index: 1, kind: input, shape index: {}]   ;;  %s3117_s2 = inlined_call_operand.vmem [shape: f32[1,128], index: 2, kind: input, shape index: {}]   ;;  %s3118_s3 = inlined_call_operand.vmem [shape: bf16[16,64], index: 3, kind: input, shape index: {}]   ;;  %s3119_s4 = inlined_call_operand.vmem [shape: bf16[16,64], index: 4, kind: input, shape index: {}]   ;;  %s3120_s5 = inlined_call_operand.vmem [shape: bf16[3,32,16], index: 5, kind: input, shape index: {}]   ;;  %s3121_s6 = inlined_call_operand.vmem [shape: f32[1,16], index: 6, kind: input, shape index: {}]   ;;  %s3122_s7 = inlined_call_operand.vmem [shape: bf16[16,32], index: 7, kind: input, shape index: {}]   ;;  %s3123_s8 = inlined_call_operand.vmem [shape: f32[1,32], index: 8, kind: input, shape index: {}]   ;;  %s3124_s9 = inlined_call_operand.vmem [shape: bf16[32,32], index: 9, kind: input, shape index: {}]   ;;  %s3125_s10 = inlined_call_operand.vmem [shape: f32[1,32], index: 10, kind: input, shape index: {}]   ;;  %s3126_s11 = inlined_call_operand.vmem [shape: bf16[32,128], index: 11, kind: input, shape index: {}]   ;;  %s3127_s12 = inlined_call_operand.vmem [shape: f32[1,128], index: 12, kind: input, shape index: {}]   ;;  %s3128_s13 = inlined_call_operand.hbm [shape: f32[2,128], index: 13, kind: output, shape index: {}]  }
   0x1   :  { %v2368_v0 = vld [vmem:[%s3116_s1 + $0x8] sm:$0xff]   ;;  %2207 = vmatprep.subr.bf16.mxu0 %v2537_v1  ;;  %v2369_v2 = vld [vmem:[%s3116_s1] sm:$0xff]   ;;  %2215 = vmatprep.subr.bf16.mxu1 %v2537_v1  ;;  %v78_v13 = vunpack.c.l.s4 %v2539_v12  ;;  %v2540_v26 = vmov 0  }
   0x2   :  { %2208 = vmatpush3.bf16.msra.mxu0 %v2368_v0  ;;  %2211 = vmatprep.mubr.msk.bf16.mxu0 %vm2538_vm0, %v2537_v1  ;;  %v46_v4 = vld [vmem:[%s3115_s0] sm:$0x1]  ;;  %v47_v5 = vld [vmem:[%s3115_s0 + $0x1] sm:$0x1]  ;;  %v48_v6 = vld [vmem:[%s3115_s0 + $0x2] sm:$0x1] }
   0x3   :  { %2209 = vmatprep.subr.bf16.mxu0 %v2537_v1  ;;  %v49_v7 = vld [vmem:[%s3115_s0 + $0x3] sm:$0x1]  ;;  %v50_v8 = vld [vmem:[%s3115_s0 + $0x4] sm:$0x1]  ;;  %v51_v9 = vld [vmem:[%s3115_s0 + $0x5] sm:$0x1]  ;;  %2217 = vmatprep.mubr.msk.bf16.mxu1 %vm2538_vm0, %v2537_v1  ;;  %v73_v15 = vcombine.low %v46_v4, %v47_v5  ;;  %v79_v20 = vunpack.c.0.s8 %v78_v13 }
   0x4   :  { %v52_v10 = vld [vmem:[%s3115_s0 + $0x6] sm:$0x1]  ;;  %v53_v11 = vld [vmem:[%s3115_s0 + $0x7] sm:$0x1]  ;;  %v81_v14 = vshrl.u32 %v80_v3, 7  ;;  %v74_v17 = vcombine.low %v48_v6, %v49_v7  ;;  %v75_v18 = vcombine.low %v50_v8, %v51_v9 }
   0x5   :  { %v2659_v16 = vld [vmem:[%s3118_s3] sm:$0xff]   ;;  %v76_v19 = vcombine.low %v52_v10, %v53_v11 }
   0x6   :  { %2210 = vmatpush3.bf16.msra.mxu0 %v2369_v2  ;;  %2216 = vmatpush3.bf16.msra.mxu1 %v2659_v16  ;;  %v82_v21 = vsub.s32 %v79_v20, %v81_v14 }
   0x7   :  { %2227 = vmatprep.subr.bf16.mxu0 %v2537_v1  ;;  %2221 = vmatprep.subr.bf16.mxu1 %v2537_v1 }
   0x8   :  { %v83_v22 = vrot.slane %v73_v15, %v82_v21  ;;  %v90_v23 = vrot.slane %v74_v17, %v82_v21  ;;  %v97_v24 = vrot.slane %v75_v18, %v82_v21  ;;  %v104_v25 = vrot.slane %v76_v19, %v82_v21 }
   0x9   :  { %2218 = vmatmul.mubr.bf16.vlgmr.msra.gmra.mxu1 %v2540_v26 }
   0xa   :  { %2222 = vmatpush3.bf16.msra.mxu1 %v2659_v16  ;;  %2223 = vmatprep.mubr.msk.bf16.mxu1 %vm2538_vm0, %v2537_v1  ;;  %v105_v27 = vcombine.low %v83_v22, %v90_v23  ;;  %v106_v28 = vcombine.low %v97_v24, %v104_v25 }
   0xb   :  { %2233 = vmatprep.subr.bf16.mxu1 %v2537_v1 }
   0xc   :  { %v113_v29 = vrot.slane %v105_v27, %v82_v21  ;;  %v120_v30 = vrot.slane %v106_v28, %v82_v21 }
   0xd   :  { %18 = vsyncpa [#allocation7], 0  ;;  %vm134_vm1 = vcmask 261120   ;;  %v2541_v32 = vmov 1983009808   ;;  %vm223_vm2 = vcmask 517120  }
   0xe   :  { %v121_v31 = vcombine.low %v113_v29, %v120_v30  ;;  %v183_v33 = vunpack.c.l.s4 %v2541_v32  ;;  %v2090_v38 = vld [vmem:[%s3117_s2] ss:$0 sm:$0xff]  ;;  %s2542_s2 = smov 96   ;;  %s2543_s29 = smov 16   ;;  %vm331_vm3 = vcmask 130048   ;;  %vm404_vm4 = vcmask 123904  }
   0xf   :  { %s2544_s30 = smov 32   ;;  %s2545_s14 = smov 80   ;;  %vm2062_vm6 = vcmask 1041408  }
  0x10   :  { %2212 = vmatmul.mubr.msk.bf16.vlgmr.msra.gmra.mxu0 %vm134_vm1, %v121_v31  ;;  %v184_v36 = vunpack.c.0.s8 %v183_v33  ;;  %s2546_s15 = smov 64  }
  0x11   :  { %2228 = vmatpush3.bf16.msra.mxu0 %v2659_v16  ;;  %2229 = vmatprep.mubr.msk.bf16.mxu0 %vm2538_vm0, %v2537_v1 }
  0x12   :  { %2239 = vmatprep.subr.bf16.mxu0 %v2537_v1  ;;  %v2677_v40 = vsub.s32 %v184_v36, %v81_v14 }
  0xc9   :  { %v369_v34 = vpop.f32.mrf.mxu1 }
  0xcb   :  { %v2219_v35 = vpop.f32.mrf.mxu1 }
  0xcd   :  { %v372_v37 = vpop.f32.mrf.mxu1 }
  0xcf   :  { %v2220_v39 = vpop.f32.mrf.mxu1 }
  0xd0   :  { %v172_v41 = vpop.f32.mrf.mxu0 }
  0xd1   :  { %v173_v42 = vadd.f32 %v2090_v38, %v172_v41 }
  0xd2   :  { %v2213_v43 = vpop.f32.mrf.mxu0 }
  0xd3   :  { %v181_v44 = vcombine.high %v173_v42, %v173_v42  ;;  %v2680_v45 = vrot.slane %v173_v42, %v2677_v40 }
  0xd4   :  { %v175_v46 = vpop.f32.mrf.mxu0 }
  0xd5   :  { %v2683_v47 = vrot.slane %v181_v44, %v2677_v40  ;;  %v2687_v48 = vcombine.high %v2680_v45, %v2680_v45  ;;  %224 = vst.msk [vmem:[#allocation2] sm:$0x3] %vm223_vm2, %v2680_v45  ;;  %v176_v49 = vadd.f32 %v2090_v38, %v175_v46  ;;  %v238_v50 = vrot.slane %v2680_v45, %v2677_v40 }
  0xd6   :  { %v2214_v51 = vpop.f32.mrf.mxu0 }
  0xd7   :  { %v2695_v52 = vcombine.high %v2683_v47, %v2683_v47  ;;  %225 = vst.msk [vmem:[#allocation2 + $0x2] sm:$0x3] %vm223_vm2, %v2687_v48  ;;  %226 = vst.msk [vmem:[#allocation2 + $0x4] sm:$0x3] %vm223_vm2, %v2683_v47  ;;  %v198_v53 = vcombine.high %v176_v49, %v176_v49  ;;  %v2702_v54 = vrot.slane %v176_v49, %v2677_v40 }
  0xd8   :  { %v252_v55 = vrot.slane %v2683_v47, %v2677_v40  ;;  %v245_v56 = vrot.slane %v2687_v48, %v2677_v40 }
  0xd9   :  { %227 = vst.msk [vmem:[#allocation2 + $0x6] sm:$0x3] %vm223_vm2, %v2695_v52  ;;  %v2711_v57 = vrot.slane %v198_v53, %v2677_v40  ;;  %v2715_v58 = vcombine.high %v2702_v54, %v2702_v54  ;;  %228 = vst.msk [vmem:[#allocation2 + $0x8] sm:$0x3] %vm223_vm2, %v2702_v54  ;;  %v266_v59 = vrot.slane %v2702_v54, %v2677_v40 }
  0xda   :  { %v259_v60 = vrot.slane %v2695_v52, %v2677_v40 }
  0xdb   :  { %229 = vst.msk [vmem:[#allocation2 + $0xa] sm:$0x3] %vm223_vm2, %v2715_v58  ;;  %230 = vst.msk [vmem:[#allocation2 + $0xc] sm:$0x3] %vm223_vm2, %v2711_v57  ;;  %v2729_v61 = vcombine.high %v2711_v57, %v2711_v57  ;;  %v280_v62 = vrot.slane %v2711_v57, %v2677_v40  ;;  %v273_v63 = vrot.slane %v2715_v58, %v2677_v40 }
  0xdc   :  { %v324_v0 = vld [vmem:[#allocation2] sm:$0x3] }
  0xdd   :  { %v375_v2 = vadd.f32 %v369_v34, %v324_v0  ;;  %231 = vst.msk [vmem:[#allocation2 + $0xe] sm:$0x3] %vm223_vm2, %v2729_v61  ;;  %v287_v4 = vrot.slane %v2729_v61, %v2677_v40 }
  0xde   :  { %v407_v21 = vld [vmem:[#allocation2 + $0x2] sm:$0x3]  ;;  %v487_v44 = vld [vmem:[#allocation2 + $0x4] sm:$0x3] }
  0xdf   :  { %2383 = vtanh.f32 %v375_v2  ;;  %v2095_v6 = vmul.f32 -1.442695, %v375_v2 }
  0xe1   :  { %2385 = vpow2.f32 %v2095_v6 }
  0xe2   :  { %v807_v61 = vld [vmem:[#allocation2 + $0xc] sm:$0x3] }
  0xec   :  { %v2384_v5 = vpop.eup %2383 }
  0xed   :  { %385 = vrot.lane.b32.xlu0 %v2384_v5, %s2542_s2 }
  0xee   :  { %v2386_v7 = vpop.eup %2385 }
  0xef   :  { %v379_v8 = vadd.f32 1.0, %v2386_v7 }
  0xf1   :  { %2387 = vrcp.f32 %v379_v8 }
  0xfe   :  { %v2388_v9 = vpop.eup %2387 }
  0xff   :  { %v383_v12 = vmul.f32 0.0, %v2388_v9 }
 0x15f   :  { %v386_v10 = vpop.permute.xlu0 %385 }
 0x160   :  { %v388_v11 = vmul.f32 %v2388_v9, %v386_v10 }
 0x162   :  { %390 = vrot.lane.b32.xlu0 %v388_v11, %s2543_s29 }
 0x1d4   :  { %v391_v13 = vpop.permute.xlu0 %390 }
 0x1d5   :  { %v393_v14 = vadd.f32 %v391_v13, %v383_v12 }
 0x1d7   :  { %2389 = vtanh.f32 %v393_v14 }
 0x1e4   :  { %v2390_v15 = vpop.eup %2389 }
 0x1e5   :  { %396 = vrot.lane.b32.xlu1 %v2390_v15, %s2544_s30 }
 0x257   :  { %v397_v17 = vpop.permute.xlu1 %396 }
 0x258   :  { %v2742_v18 = vmul.f32 %v2388_v9, %v397_v17 }
 0x25a   :  { %v408_v19 = vpack.c.bf16 %v2742_v18, %v2742_v18 }
 0x25c   :  { %410 = vrot.lane.b32.xlu1 %v408_v19, %s2545_s14 }
 0x2ce   :  { %v411_v20 = vpop.permute.xlu1 %410 }
 0x2cf   :  { %2224 = vmatmul.mubr.msk.bf16.vlgmr.msra.gmra.mxu1 %vm331_vm3, %v411_v20 }
 0x2d0   :  { %2234 = vmatpush3.bf16.msra.mxu1 %v2659_v16  ;;  %2235 = vmatprep.mubr.msk.bf16.mxu1 %vm2538_vm0, %v2537_v1 }
 0x2d1   :  { %2245 = vmatprep.subr.bf16.mxu1 %v2537_v1 }
 0x38f   :  { %v449_v22 = vpop.f32.mrf.mxu1 }
 0x390   :  { %v455_v23 = vadd.f32 %v449_v22, %v407_v21  ;;  %v567_v21 = vld [vmem:[#allocation2 + $0x6] sm:$0x3] }
 0x391   :  { %v2225_v24 = vpop.f32.mrf.mxu1 }
 0x392   :  { %2391 = vtanh.f32 %v455_v23  ;;  %v2097_v29 = vmul.f32 -1.442695, %v455_v23 }
 0x393   :  { %v452_v25 = vpop.f32.mrf.mxu1 }
 0x394   :  { %2393 = vpow2.f32 %v2097_v29 }
 0x395   :  { %v2226_v27 = vpop.f32.mrf.mxu1 }
 0x39f   :  { %v2392_v28 = vpop.eup %2391 }
 0x3a0   :  { %465 = vrot.lane.b32.xlu0 %v2392_v28, %s2542_s2 }
 0x3a1   :  { %v2394_v30 = vpop.eup %2393 }
 0x3a2   :  { %v459_v31 = vadd.f32 1.0, %v2394_v30 }
 0x3a4   :  { %2395 = vrcp.f32 %v459_v31 }
 0x3b1   :  { %v2396_v32 = vpop.eup %2395 }
 0x3b2   :  { %v463_v35 = vmul.f32 %v2396_v32, %v393_v14 }
 0x412   :  { %v466_v33 = vpop.permute.xlu0 %465 }
 0x413   :  { %v468_v34 = vmul.f32 %v2396_v32, %v466_v33 }
 0x415   :  { %470 = vrot.lane.b32.xlu1 %v468_v34, %s2543_s29 }
 0x487   :  { %v471_v36 = vpop.permute.xlu1 %470 }
 0x488   :  { %v473_v37 = vadd.f32 %v471_v36, %v463_v35 }
 0x48a   :  { %2397 = vtanh.f32 %v473_v37 }
 0x497   :  { %v2398_v38 = vpop.eup %2397 }
 0x498   :  { %476 = vrot.lane.b32.xlu0 %v2398_v38, %s2544_s30 }
 0x50a   :  { %v477_v39 = vpop.permute.xlu0 %476 }
 0x50b   :  { %v2755_v41 = vmul.f32 %v2396_v32, %v477_v39 }
 0x50d   :  { %v488_v42 = vpack.c.bf16 %v2755_v41, %v2755_v41 }
 0x50f   :  { %490 = vrot.lane.b32.xlu1 %v488_v42, %s2545_s14 }
 0x581   :  { %v491_v43 = vpop.permute.xlu1 %490 }
 0x582   :  { %2230 = vmatmul.mubr.msk.bf16.vlgmr.msra.gmra.mxu0 %vm331_vm3, %v491_v43 }
 0x583   :  { %2240 = vmatpush3.bf16.msra.mxu0 %v2659_v16  ;;  %2241 = vmatprep.mubr.msk.bf16.mxu0 %vm2538_vm0, %v2537_v1 }
 0x584   :  { %2251 = vmatprep.subr.bf16.mxu0 %v2537_v1 }
 0x642   :  { %v529_v46 = vpop.f32.mrf.mxu0 }
 0x643   :  { %v535_v49 = vadd.f32 %v529_v46, %v487_v44  ;;  %v647_v46 = vld [vmem:[#allocation2 + $0x8] sm:$0x3] }
 0x644   :  { %v2231_v51 = vpop.f32.mrf.mxu0 }
 0x645   :  { %2399 = vtanh.f32 %v535_v49  ;;  %v2099_v5 = vmul.f32 -1.442695, %v535_v49 }
 0x646   :  { %v532_v53 = vpop.f32.mrf.mxu0 }
 0x647   :  { %2401 = vpow2.f32 %v2099_v5 }
 0x648   :  { %v2232_v0 = vpop.f32.mrf.mxu0 }
 0x652   :  { %v2400_v2 = vpop.eup %2399 }
 0x653   :  { %545 = vrot.lane.b32.xlu0 %v2400_v2, %s2542_s2 }
 0x654   :  { %v2402_v6 = vpop.eup %2401 }
 0x655   :  { %v539_v7 = vadd.f32 1.0, %v2402_v6 }
 0x657   :  { %2403 = vrcp.f32 %v539_v7 }
 0x664   :  { %v2404_v8 = vpop.eup %2403 }
 0x665   :  { %v543_v11 = vmul.f32 %v2404_v8, %v473_v37 }
 0x6c5   :  { %v546_v9 = vpop.permute.xlu0 %545 }
 0x6c6   :  { %v548_v10 = vmul.f32 %v2404_v8, %v546_v9 }
 0x6c8   :  { %550 = vrot.lane.b32.xlu1 %v548_v10, %s2543_s29 }
 0x73a   :  { %v551_v12 = vpop.permute.xlu1 %550 }
 0x73b   :  { %v553_v13 = vadd.f32 %v551_v12, %v543_v11 }
 0x73d   :  { %2405 = vtanh.f32 %v553_v13 }
 0x74a   :  { %v2406_v14 = vpop.eup %2405 }
 0x74b   :  { %556 = vrot.lane.b32.xlu0 %v2406_v14, %s2544_s30 }
 0x7bd   :  { %v557_v15 = vpop.permute.xlu0 %556 }
 0x7be   :  { %v2768_v17 = vmul.f32 %v2404_v8, %v557_v15 }
 0x7c0   :  { %v568_v19 = vpack.c.bf16 %v2768_v17, %v2768_v17 }
 0x7c2   :  { %570 = vrot.lane.b32.xlu1 %v568_v19, %s2545_s14 }
 0x834   :  { %v571_v20 = vpop.permute.xlu1 %570 }
 0x835   :  { %2236 = vmatmul.mubr.msk.bf16.vlgmr.msra.gmra.mxu1 %vm331_vm3, %v571_v20 }
 0x836   :  { %2246 = vmatpush3.bf16.msra.mxu1 %v2659_v16  ;;  %2247 = vmatprep.mubr.msk.bf16.mxu1 %vm2538_vm0, %v2537_v1 }
 0x837   :  { %2257 = vmatprep.subr.bf16.mxu1 %v2537_v1 }
 0x8f5   :  { %v609_v22 = vpop.f32.mrf.mxu1 }
 0x8f6   :  { %v615_v23 = vadd.f32 %v609_v22, %v567_v21 }
 0x8f7   :  { %v2237_v24 = vpop.f32.mrf.mxu1 }
 0x8f8   :  { %2407 = vtanh.f32 %v615_v23  ;;  %v2101_v29 = vmul.f32 -1.442695, %v615_v23  ;;  %v727_v23 = vld [vmem:[#allocation2 + $0xa] sm:$0x3] }
 0x8f9   :  { %v612_v25 = vpop.f32.mrf.mxu1 }
 0x8fa   :  { %2409 = vpow2.f32 %v2101_v29 }
 0x8fb   :  { %v2238_v27 = vpop.f32.mrf.mxu1 }
 0x905   :  { %v2408_v28 = vpop.eup %2407 }
 0x906   :  { %625 = vrot.lane.b32.xlu0 %v2408_v28, %s2542_s2 }
 0x907   :  { %v2410_v30 = vpop.eup %2409 }
 0x908   :  { %v619_v31 = vadd.f32 1.0, %v2410_v30 }
 0x90a   :  { %2411 = vrcp.f32 %v619_v31 }
 0x917   :  { %v2412_v32 = vpop.eup %2411 }
 0x918   :  { %v623_v35 = vmul.f32 %v2412_v32, %v553_v13 }
 0x978   :  { %v626_v33 = vpop.permute.xlu0 %625 }
 0x979   :  { %v628_v34 = vmul.f32 %v2412_v32, %v626_v33 }
 0x97b   :  { %630 = vrot.lane.b32.xlu1 %v628_v34, %s2543_s29 }
 0x9ed   :  { %v631_v36 = vpop.permute.xlu1 %630 }
 0x9ee   :  { %v633_v37 = vadd.f32 %v631_v36, %v623_v35 }
 0x9f0   :  { %2413 = vtanh.f32 %v633_v37 }
 0x9fd   :  { %v2414_v38 = vpop.eup %2413 }
 0x9fe   :  { %636 = vrot.lane.b32.xlu0 %v2414_v38, %s2544_s30 }
 0xa70   :  { %v637_v39 = vpop.permute.xlu0 %636 }
 0xa71   :  { %v2781_v42 = vmul.f32 %v2412_v32, %v637_v39 }
 0xa73   :  { %v648_v43 = vpack.c.bf16 %v2781_v42, %v2781_v42 }
 0xa75   :  { %650 = vrot.lane.b32.xlu1 %v648_v43, %s2545_s14 }
 0xae7   :  { %v651_v44 = vpop.permute.xlu1 %650 }
 0xae8   :  { %2242 = vmatmul.mubr.msk.bf16.vlgmr.msra.gmra.mxu0 %vm331_vm3, %v651_v44 }
 0xae9   :  { %2252 = vmatpush3.bf16.msra.mxu0 %v2659_v16  ;;  %2253 = vmatprep.mubr.msk.bf16.mxu0 %vm2538_vm0, %v2537_v1 }
 0xaea   :  { %2263 = vmatprep.subr.bf16.mxu0 %v2537_v1 }
 0xba8   :  { %v689_v49 = vpop.f32.mrf.mxu0 }
 0xba9   :  { %v695_v51 = vadd.f32 %v689_v49, %v647_v46 }
 0xbaa   :  { %v2243_v53 = vpop.f32.mrf.mxu0 }
 0xbab   :  { %2415 = vtanh.f32 %v695_v51  ;;  %v2103_v6 = vmul.f32 -1.442695, %v695_v51  ;;  %v2820_v51 = vld [vmem:[%s3119_s4] sm:$0xff]  }
 0xbac   :  { %v692_v0 = vpop.f32.mrf.mxu0 }
 0xbad   :  { %2417 = vpow2.f32 %v2103_v6 }
 0xbae   :  { %v2244_v2 = vpop.f32.mrf.mxu0 }
 0xbb8   :  { %v2416_v5 = vpop.eup %2415 }
 0xbb9   :  { %705 = vrot.lane.b32.xlu0 %v2416_v5, %s2542_s2 }
 0xbba   :  { %v2418_v7 = vpop.eup %2417 }
 0xbbb   :  { %v699_v8 = vadd.f32 1.0, %v2418_v7 }
 0xbbd   :  { %2419 = vrcp.f32 %v699_v8 }
 0xbca   :  { %v2420_v9 = vpop.eup %2419 }
 0xbcb   :  { %v703_v12 = vmul.f32 %v2420_v9, %v633_v37 }
 0xc2b   :  { %v706_v10 = vpop.permute.xlu0 %705 }
 0xc2c   :  { %v708_v11 = vmul.f32 %v2420_v9, %v706_v10 }
 0xc2e   :  { %710 = vrot.lane.b32.xlu1 %v708_v11, %s2543_s29 }
 0xca0   :  { %v711_v13 = vpop.permute.xlu1 %710 }
 0xca1   :  { %v713_v14 = vadd.f32 %v711_v13, %v703_v12 }
 0xca3   :  { %2421 = vtanh.f32 %v713_v14 }
 0xcb0   :  { %v2422_v15 = vpop.eup %2421 }
 0xcb1   :  { %716 = vrot.lane.b32.xlu0 %v2422_v15, %s2544_s30 }
 0xd23   :  { %v717_v19 = vpop.permute.xlu0 %716 }
 0xd24   :  { %v2794_v20 = vmul.f32 %v2420_v9, %v717_v19 }
 0xd26   :  { %v728_v21 = vpack.c.bf16 %v2794_v20, %v2794_v20 }
 0xd28   :  { %730 = vrot.lane.b32.xlu1 %v728_v21, %s2545_s14 }
 0xd9a   :  { %v731_v22 = vpop.permute.xlu1 %730 }
 0xd9b   :  { %2248 = vmatmul.mubr.msk.bf16.vlgmr.msra.gmra.mxu1 %vm331_vm3, %v731_v22 }
 0xd9c   :  { %2258 = vmatpush3.bf16.msra.mxu1 %v2659_v16  ;;  %2259 = vmatprep.mubr.msk.bf16.mxu1 %vm2538_vm0, %v2537_v1 }
 0xd9d   :  { %2269 = vmatprep.subr.bf16.mxu1 %v2537_v1 }
 0xe5b   :  { %v769_v24 = vpop.f32.mrf.mxu1 }
 0xe5c   :  { %v775_v25 = vadd.f32 %v769_v24, %v727_v23 }
 0xe5d   :  { %v2249_v27 = vpop.f32.mrf.mxu1 }
 0xe5e   :  { %2423 = vtanh.f32 %v775_v25  ;;  %v2105_v31 = vmul.f32 -1.442695, %v775_v25 }
 0xe5f   :  { %v772_v28 = vpop.f32.mrf.mxu1 }
 0xe60   :  { %2425 = vpow2.f32 %v2105_v31 }
 0xe61   :  { %v2250_v29 = vpop.f32.mrf.mxu1 }
 0xe6b   :  { %v2424_v30 = vpop.eup %2423 }
 0xe6c   :  { %785 = vrot.lane.b32.xlu0 %v2424_v30, %s2542_s2 }
 0xe6d   :  { %v2426_v32 = vpop.eup %2425 }
 0xe6e   :  { %v779_v33 = vadd.f32 1.0, %v2426_v32 }
 0xe70   :  { %2427 = vrcp.f32 %v779_v33 }
 0xe7d   :  { %v2428_v16 = vpop.eup %2427 }
 0xe7e   :  { %v783_v36 = vmul.f32 %v2428_v16, %v713_v14 }
 0xede   :  { %v786_v34 = vpop.permute.xlu0 %785 }
 0xedf   :  { %v788_v35 = vmul.f32 %v2428_v16, %v786_v34 }
 0xee1   :  { %790 = vrot.lane.b32.xlu1 %v788_v35, %s2543_s29 }
 0xf53   :  { %v791_v37 = vpop.permute.xlu1 %790 }
 0xf54   :  { %v793_v38 = vadd.f32 %v791_v37, %v783_v36 }
 0xf56   :  { %2429 = vtanh.f32 %v793_v38 }
 0xf63   :  { %v2430_v39 = vpop.eup %2429 }
 0xf64   :  { %796 = vrot.lane.b32.xlu0 %v2430_v39, %s2544_s30 }
 0xf68   :  { %302 = vrot.lane.b32.xlu0 %v287_v4, %s2546_s15 }
 0xfd6   :  { %v797_v43 = vpop.permute.xlu0 %796 }
 0xfd7   :  { %v2811_v44 = vmul.f32 %v2428_v16, %v797_v43 }
 0xfd9   :  { %v808_v46 = vpack.c.bf16 %v2811_v44, %v2811_v44 }
 0xfda   :  { %v303_v49 = vpop.permute.xlu0 %302 }
 0xfdb   :  { %319 = vst.msk [vmem:[#allocation3 + $0xe] sm:$0x3] %vm223_vm2, %v303_v49  ;;  %810 = vrot.lane.b32.xlu1 %v808_v46, %s2545_s14 }
 0xfe2   :  { %v967_v7 = vld [vmem:[#allocation3 + $0xe] sm:$0x3] }
0x104d   :  { %v811_v53 = vpop.permute.xlu1 %810 }
0x104e   :  { %2254 = vmatmul.mubr.msk.bf16.vlgmr.msra.gmra.mxu0 %vm331_vm3, %v811_v53 }
0x104f   :  { %2264 = vmatpush3.bf16.msra.mxu0 %v2820_v51  ;;  %2265 = vmatprep.mubr.msk.bf16.mxu0 %vm2538_vm0, %v2537_v1 }
0x1050   :  { %2275 = vmatprep.subr.bf16.mxu0 %v2537_v1 }
0x1056   :  { %2266 = vmatmul.mubr.bf16.vlgmr.msra.gmra.mxu0 %v2540_v26 }
0x1057   :  { %2276 = vmatpush3.bf16.msra.mxu0 %v2820_v51  ;;  %2277 = vmatprep.mubr.msk.bf16.mxu0 %vm2538_vm0, %v2537_v1 }
0x1058   :  { %2287 = vmatprep.subr.bf16.mxu0 %v2537_v1 }
0x110e   :  { %v849_v4 = vpop.f32.mrf.mxu0 }
0x110f   :  { %v855_v0 = vadd.f32 %v849_v4, %v807_v61 }
0x1110   :  { %v2255_v2 = vpop.f32.mrf.mxu0 }
0x1111   :  { %2431 = vtanh.f32 %v855_v0  ;;  %v2107_v14 = vmul.f32 -1.442695, %v855_v0 }
0x1112   :  { %v852_v5 = vpop.f32.mrf.mxu0 }
0x1114   :  { %v2256_v6 = vpop.f32.mrf.mxu0 }
0x1116   :  { %v1008_v8 = vpop.f32.mrf.mxu0 }
0x1117   :  { %v1014_v9 = vadd.f32 %v1008_v8, %v967_v7 }
0x1118   :  { %v2267_v10 = vpop.f32.mrf.mxu0 }
0x1119   :  { %2433 = vtanh.f32 %v1014_v9  ;;  %v2111_v15 = vmul.f32 -1.442695, %v1014_v9 }
0x111a   :  { %v1011_v26 = vpop.f32.mrf.mxu0  ;;  %2435 = vpow2.f32 %v2107_v14 }
0x111b   :  { %2437 = vpow2.f32 %v2111_v15 }
0x111c   :  { %v2268_v11 = vpop.f32.mrf.mxu0 }
0x111e   :  { %v2432_v12 = vpop.eup %2431 }
0x111f   :  { %865 = vrot.lane.b32.xlu1 %v2432_v12, %s2542_s2 }
0x1126   :  { %v2434_v13 = vpop.eup %2433 }
0x1127   :  { %1024 = vrot.lane.b32.xlu0 %v2434_v13, %s2542_s2  ;;  %v2436_v19 = vpop.eup %2435 }
0x1128   :  { %v859_v21 = vadd.f32 1.0, %v2436_v19  ;;  %v2438_v22 = vpop.eup %2437 }
0x1129   :  { %v1018_v23 = vadd.f32 1.0, %v2438_v22 }
0x112a   :  { %2439 = vrcp.f32 %v859_v21 }
0x112b   :  { %2441 = vrcp.f32 %v1018_v23 }
0x1137   :  { %v2440_v24 = vpop.eup %2439 }
0x1138   :  { %v2442_v28 = vpop.eup %2441  ;;  %v863_v31 = vmul.f32 %v2440_v24, %v793_v38 }
0x1139   :  { %v1022_v16 = vmul.f32 0.0, %v2442_v28 }
0x1191   :  { %v866_v25 = vpop.permute.xlu1 %865 }
0x1192   :  { %v868_v27 = vmul.f32 %v2440_v24, %v866_v25 }
0x1194   :  { %870 = vrot.lane.b32.xlu1 %v868_v27, %s2543_s29 }
0x1199   :  { %v1025_v29 = vpop.permute.xlu0 %1024 }
0x119a   :  { %v1027_v30 = vmul.f32 %v2442_v28, %v1025_v29 }
0x119c   :  { %1029 = vrot.lane.b32.xlu0 %v1027_v30, %s2543_s29 }
0x1206   :  { %v871_v32 = vpop.permute.xlu1 %870 }
0x1207   :  { %v2836_v33 = vadd.f32 %v871_v32, %v863_v31 }
0x1209   :  { %2443 = vtanh.f32 %v2836_v33 }
0x120e   :  { %v1030_v34 = vpop.permute.xlu0 %1029 }
0x120f   :  { %v1032_v35 = vadd.f32 %v1030_v34, %v1022_v16 }
0x1211   :  { %2445 = vtanh.f32 %v1032_v35 }
0x1216   :  { %v2444_v36 = vpop.eup %2443 }
0x1217   :  { %876 = vrot.lane.b32.xlu1 %v2444_v36, %s2544_s30 }
0x121e   :  { %v2446_v37 = vpop.eup %2445 }
0x121f   :  { %1035 = vrot.lane.b32.xlu0 %v2446_v37, %s2544_s30 }
0x1289   :  { %v877_v39 = vpop.permute.xlu1 %876 }
0x128a   :  { %v2841_v43 = vmul.f32 %v2440_v24, %v877_v39 }
0x128c   :  { %v888_v38 = vpack.c.bf16 %v2841_v43, %v2841_v43 }
0x128e   :  { %890 = vrot.lane.b32.xlu1 %v888_v38, %s2545_s14 }
0x1291   :  { %v1036_v46 = vpop.permute.xlu0 %1035 }
0x1292   :  { %v2846_v49 = vmul.f32 %v2442_v28, %v1036_v46  ;;  %300 = vrot.lane.b32.xlu1 %v280_v62, %s2546_s15 }
0x1294   :  { %v1047_v53 = vpack.c.bf16 %v2846_v49, %v2846_v49 }
0x1296   :  { %1049 = vrot.lane.b32.xlu0 %v1047_v53, %s2545_s14 }
0x1300   :  { %v891_v61 = vpop.permute.xlu1 %890 }
0x1301   :  { %2260 = vmatmul.mubr.msk.bf16.vlgmr.msra.gmra.mxu1 %vm331_vm3, %v891_v61 }
0x1302   :  { %2270 = vmatpush3.bf16.msra.mxu1 %v2820_v51  ;;  %2271 = vmatprep.mubr.msk.bf16.mxu1 %vm2538_vm0, %v2537_v1 }
0x1303   :  { %2281 = vmatprep.subr.bf16.mxu1 %v2537_v1 }
0x1304   :  { %v301_v4 = vpop.permute.xlu1 %300 }
0x1305   :  { %318 = vst.msk [vmem:[#allocation3 + $0xc] sm:$0x3] %vm223_vm2, %v301_v4 }
0x1308   :  { %v1050_v57 = vpop.permute.xlu0 %1049 }
0x1309   :  { %2272 = vmatmul.mubr.msk.bf16.vlgmr.msra.gmra.mxu1 %vm331_vm3, %v1050_v57 }
0x130a   :  { %2282 = vmatpush3.bf16.msra.mxu1 %v2820_v51  ;;  %2283 = vmatprep.mubr.msk.bf16.mxu1 %vm2538_vm0, %v2537_v1 }
0x130b   :  { %2293 = vmatprep.subr.bf16.mxu1 %v2537_v1 }
0x130c   :  { %v1046_v6 = vld [vmem:[#allocation3 + $0xc] sm:$0x3] }
0x13c1   :  { %v2866_v62 = vpop.f32.mrf.mxu1 }
0x13c3   :  { %v2261_v0 = vpop.f32.mrf.mxu1 }
0x13c5   :  { %v932_v2 = vpop.f32.mrf.mxu1 }
0x13c7   :  { %v2262_v5 = vpop.f32.mrf.mxu1 }
0x13c9   :  { %v1088_v7 = vpop.f32.mrf.mxu1 }
0x13ca   :  { %v1094_v8 = vadd.f32 %v1088_v7, %v1046_v6 }
0x13cb   :  { %v2273_v9 = vpop.f32.mrf.mxu1 }
0x13cc   :  { %2447 = vtanh.f32 %v1094_v8  ;;  %v2113_v12 = vmul.f32 -1.442695, %v1094_v8 }
0x13cd   :  { %v1091_v10 = vpop.f32.mrf.mxu1 }
0x13ce   :  { %2449 = vpow2.f32 %v2113_v12 }
0x13cf   :  { %v2274_v26 = vpop.f32.mrf.mxu1 }
0x13d9   :  { %v2448_v11 = vpop.eup %2447 }
0x13da   :  { %1104 = vrot.lane.b32.xlu0 %v2448_v11, %s2542_s2 }
0x13db   :  { %v2450_v13 = vpop.eup %2449 }
0x13dc   :  { %v1098_v14 = vadd.f32 1.0, %v2450_v13 }
0x13de   :  { %2451 = vrcp.f32 %v1098_v14 }
0x13eb   :  { %v2452_v15 = vpop.eup %2451 }
0x13ec   :  { %v1102_v22 = vmul.f32 %v2452_v15, %v1032_v35 }
0x144c   :  { %v1105_v19 = vpop.permute.xlu0 %1104 }
0x144d   :  { %v1107_v21 = vmul.f32 %v2452_v15, %v1105_v19 }
0x144f   :  { %1109 = vrot.lane.b32.xlu1 %v1107_v21, %s2543_s29 }
0x14c1   :  { %v1110_v23 = vpop.permute.xlu1 %1109 }
0x14c2   :  { %v1112_v24 = vadd.f32 %v1110_v23, %v1102_v22 }
0x14c4   :  { %2453 = vtanh.f32 %v1112_v24 }
0x14d1   :  { %v2454_v25 = vpop.eup %2453 }
0x14d2   :  { %1115 = vrot.lane.b32.xlu0 %v2454_v25, %s2544_s30 }
0x14d6   :  { %298 = vrot.lane.b32.xlu0 %v273_v63, %s2546_s15 }
0x1544   :  { %v1116_v27 = vpop.permute.xlu0 %1115 }
0x1545   :  { %v2875_v28 = vmul.f32 %v2452_v15, %v1116_v27 }
0x1547   :  { %v1127_v29 = vpack.c.bf16 %v2875_v28, %v2875_v28 }
0x1548   :  { %v299_v30 = vpop.permute.xlu0 %298 }
0x1549   :  { %317 = vst.msk [vmem:[#allocation3 + $0xa] sm:$0x3] %vm223_vm2, %v299_v30  ;;  %1129 = vrot.lane.b32.xlu1 %v1127_v29, %s2545_s14 }
0x1550   :  { %v1126_v58 = vld [vmem:[#allocation3 + $0xa] sm:$0x3] }
0x15bb   :  { %v1130_v31 = vpop.permute.xlu1 %1129 }
0x15bc   :  { %2278 = vmatmul.mubr.msk.bf16.vlgmr.msra.gmra.mxu0 %vm331_vm3, %v1130_v31 }
0x15bd   :  { %2288 = vmatpush3.bf16.msra.mxu0 %v2820_v51  ;;  %2289 = vmatprep.mubr.msk.bf16.mxu0 %vm2538_vm0, %v2537_v1 }
0x15be   :  { %2299 = vmatprep.subr.bf16.mxu0 %v2537_v1 }
0x167c   :  { %v1168_v63 = vpop.f32.mrf.mxu0 }
0x167d   :  { %v1174_v32 = vadd.f32 %v1168_v63, %v1126_v58 }
0x167e   :  { %v2279_v16 = vpop.f32.mrf.mxu0 }
0x167f   :  { %2455 = vtanh.f32 %v1174_v32  ;;  %v2115_v37 = vmul.f32 -1.442695, %v1174_v32 }
0x1680   :  { %v1171_v34 = vpop.f32.mrf.mxu0 }
0x1681   :  { %2457 = vpow2.f32 %v2115_v37 }
0x1682   :  { %v2280_v35 = vpop.f32.mrf.mxu0 }
0x168c   :  { %v2456_v36 = vpop.eup %2455 }
0x168d   :  { %1184 = vrot.lane.b32.xlu1 %v2456_v36, %s2542_s2 }
0x168e   :  { %v2458_v39 = vpop.eup %2457 }
0x168f   :  { %v1178_v38 = vadd.f32 1.0, %v2458_v39 }
0x1691   :  { %2459 = vrcp.f32 %v1178_v38 }
0x169e   :  { %v2460_v46 = vpop.eup %2459 }
0x169f   :  { %v1182_v4 = vmul.f32 %v2460_v46, %v1112_v24 }
0x16ff   :  { %v1185_v53 = vpop.permute.xlu1 %1184 }
0x1700   :  { %v1187_v61 = vmul.f32 %v2460_v46, %v1185_v53 }
0x1702   :  { %1189 = vrot.lane.b32.xlu0 %v1187_v61, %s2543_s29 }
0x1774   :  { %v1190_v57 = vpop.permute.xlu0 %1189 }
0x1775   :  { %v1192_v0 = vadd.f32 %v1190_v57, %v1182_v4 }
0x1777   :  { %2461 = vtanh.f32 %v1192_v0 }
0x1784   :  { %v2462_v2 = vpop.eup %2461 }
0x1785   :  { %1195 = vrot.lane.b32.xlu1 %v2462_v2, %s2544_s30 }
0x1789   :  { %296 = vrot.lane.b32.xlu1 %v266_v59, %s2546_s15 }
0x17f7   :  { %v1196_v5 = vpop.permute.xlu1 %1195 }
0x17f8   :  { %v2893_v6 = vmul.f32 %v2460_v46, %v1196_v5 }
0x17fa   :  { %v1207_v7 = vpack.c.bf16 %v2893_v6, %v2893_v6 }
0x17fb   :  { %v297_v8 = vpop.permute.xlu1 %296 }
0x17fc   :  { %316 = vst.msk [vmem:[#allocation3 + $0x8] sm:$0x3] %vm223_vm2, %v297_v8  ;;  %1209 = vrot.lane.b32.xlu0 %v1207_v7, %s2545_s14 }
0x1803   :  { %v1206_v54 = vld [vmem:[#allocation3 + $0x8] sm:$0x3] }
0x186e   :  { %v1210_v9 = vpop.permute.xlu0 %1209 }
0x186f   :  { %2284 = vmatmul.mubr.msk.bf16.vlgmr.msra.gmra.mxu1 %vm331_vm3, %v1210_v9 }
0x1870   :  { %2294 = vmatpush3.bf16.msra.mxu1 %v2820_v51  ;;  %2295 = vmatprep.mubr.msk.bf16.mxu1 %vm2538_vm0, %v2537_v1 }
0x1871   :  { %2305 = vmatprep.subr.bf16.mxu1 %v2537_v1 }
0x192f   :  { %v1248_v59 = vpop.f32.mrf.mxu1 }
0x1930   :  { %v1254_v10 = vadd.f32 %v1248_v59, %v1206_v54 }
0x1931   :  { %v2285_v26 = vpop.f32.mrf.mxu1 }
0x1932   :  { %2463 = vtanh.f32 %v1254_v10  ;;  %v2117_v14 = vmul.f32 -1.442695, %v1254_v10 }
0x1933   :  { %v1251_v11 = vpop.f32.mrf.mxu1 }
0x1934   :  { %2465 = vpow2.f32 %v2117_v14 }
0x1935   :  { %v2286_v12 = vpop.f32.mrf.mxu1 }
0x193f   :  { %v2464_v13 = vpop.eup %2463 }
0x1940   :  { %1264 = vrot.lane.b32.xlu0 %v2464_v13, %s2542_s2 }
0x1941   :  { %v2466_v15 = vpop.eup %2465 }
0x1942   :  { %v1258_v19 = vadd.f32 1.0, %v2466_v15 }
0x1944   :  { %2467 = vrcp.f32 %v1258_v19 }
0x1951   :  { %v2468_v21 = vpop.eup %2467 }
0x1952   :  { %v1262_v24 = vmul.f32 %v2468_v21, %v1192_v0 }
0x19b2   :  { %v1265_v22 = vpop.permute.xlu0 %1264 }
0x19b3   :  { %v1267_v23 = vmul.f32 %v2468_v21, %v1265_v22 }
0x19b5   :  { %1269 = vrot.lane.b32.xlu1 %v1267_v23, %s2543_s29 }
0x1a27   :  { %v1270_v25 = vpop.permute.xlu1 %1269 }
0x1a28   :  { %v1272_v27 = vadd.f32 %v1270_v25, %v1262_v24 }
0x1a2a   :  { %2469 = vtanh.f32 %v1272_v27 }
0x1a37   :  { %v2470_v29 = vpop.eup %2469 }
0x1a38   :  { %1275 = vrot.lane.b32.xlu0 %v2470_v29, %s2544_s30 }
0x1a3c   :  { %294 = vrot.lane.b32.xlu0 %v259_v60, %s2546_s15 }
0x1aaa   :  { %v1276_v30 = vpop.permute.xlu0 %1275 }
0x1aab   :  { %v2911_v31 = vmul.f32 %v2468_v21, %v1276_v30 }
0x1aad   :  { %v1287_v58 = vpack.c.bf16 %v2911_v31, %v2911_v31 }
0x1aae   :  { %v295_v63 = vpop.permute.xlu0 %294 }
0x1aaf   :  { %315 = vst.msk [vmem:[#allocation3 + $0x6] sm:$0x3] %vm223_vm2, %v295_v63  ;;  %1289 = vrot.lane.b32.xlu1 %v1287_v58, %s2545_s14 }
0x1ab6   :  { %v1286_v52 = vld [vmem:[#allocation3 + $0x6] sm:$0x3] }
0x1b21   :  { %v1290_v32 = vpop.permute.xlu1 %1289 }
0x1b22   :  { %2290 = vmatmul.mubr.msk.bf16.vlgmr.msra.gmra.mxu0 %vm331_vm3, %v1290_v32 }
0x1b23   :  { %2300 = vmatpush3.bf16.msra.mxu0 %v2820_v51  ;;  %2301 = vmatprep.mubr.msk.bf16.mxu0 %vm2538_vm0, %v2537_v1 }
0x1b24   :  { %2311 = vmatprep.subr.bf16.mxu0 %v2537_v1 }
0x1be2   :  { %v1328_v60 = vpop.f32.mrf.mxu0 }
0x1be3   :  { %v1334_v16 = vadd.f32 %v1328_v60, %v1286_v52 }
0x1be4   :  { %v2291_v34 = vpop.f32.mrf.mxu0 }
0x1be5   :  { %2471 = vtanh.f32 %v1334_v16  ;;  %v2119_v39 = vmul.f32 -1.442695, %v1334_v16 }
0x1be6   :  { %v1331_v35 = vpop.f32.mrf.mxu0 }
0x1be7   :  { %2473 = vpow2.f32 %v2119_v39 }
0x1be8   :  { %v2292_v36 = vpop.f32.mrf.mxu0 }
0x1bf2   :  { %v2472_v37 = vpop.eup %2471 }
0x1bf3   :  { %1344 = vrot.lane.b32.xlu1 %v2472_v37, %s2542_s2 }
0x1bf4   :  { %v2474_v38 = vpop.eup %2473 }
0x1bf5   :  { %v1338_v46 = vadd.f32 1.0, %v2474_v38 }
0x1bf7   :  { %2475 = vrcp.f32 %v1338_v46 }
0x1c04   :  { %v2476_v53 = vpop.eup %2475 }
0x1c05   :  { %v1342_v57 = vmul.f32 %v2476_v53, %v1272_v27 }
0x1c65   :  { %v1345_v61 = vpop.permute.xlu1 %1344 }
0x1c66   :  { %v1347_v4 = vmul.f32 %v2476_v53, %v1345_v61 }
0x1c68   :  { %1349 = vrot.lane.b32.xlu0 %v1347_v4, %s2543_s29 }
0x1cda   :  { %v1350_v0 = vpop.permute.xlu0 %1349 }
0x1cdb   :  { %v1352_v2 = vadd.f32 %v1350_v0, %v1342_v57 }
0x1cdd   :  { %2477 = vtanh.f32 %v1352_v2 }
0x1cea   :  { %v2478_v5 = vpop.eup %2477 }
0x1ceb   :  { %1355 = vrot.lane.b32.xlu1 %v2478_v5, %s2544_s30 }
0x1cef   :  { %292 = vrot.lane.b32.xlu1 %v252_v55, %s2546_s15 }
0x1d5d   :  { %v1356_v7 = vpop.permute.xlu1 %1355 }
0x1d5e   :  { %v2929_v8 = vmul.f32 %v2476_v53, %v1356_v7 }
0x1d60   :  { %v1367_v9 = vpack.c.bf16 %v2929_v8, %v2929_v8 }
0x1d61   :  { %v293_v54 = vpop.permute.xlu1 %292 }
0x1d62   :  { %314 = vst.msk [vmem:[#allocation3 + $0x4] sm:$0x3] %vm223_vm2, %v293_v54  ;;  %1369 = vrot.lane.b32.xlu0 %v1367_v9, %s2545_s14 }
0x1d69   :  { %v1366_v47 = vld [vmem:[#allocation3 + $0x4] sm:$0x3] }
0x1dd4   :  { %v1370_v59 = vpop.permute.xlu0 %1369 }
0x1dd5   :  { %2296 = vmatmul.mubr.msk.bf16.vlgmr.msra.gmra.mxu1 %vm331_vm3, %v1370_v59 }
0x1dd6   :  { %2306 = vmatpush3.bf16.msra.mxu1 %v2820_v51  ;;  %2307 = vmatprep.mubr.msk.bf16.mxu1 %vm2538_vm0, %v2537_v1 }
0x1dd7   :  { %2319 = vmatprep.subr.bf16.mxu1 %v2537_v1 }
0x1e95   :  { %v1408_v55 = vpop.f32.mrf.mxu1 }
0x1e96   :  { %v1414_v10 = vadd.f32 %v1408_v55, %v1366_v47 }
0x1e97   :  { %v2297_v26 = vpop.f32.mrf.mxu1 }
0x1e98   :  { %2479 = vtanh.f32 %v1414_v10  ;;  %v2121_v14 = vmul.f32 -1.442695, %v1414_v10  ;;  %v887_v10 = vld [vmem:[#allocation2 + $0xe] sm:$0x3] }
0x1e99   :  { %v1411_v11 = vpop.f32.mrf.mxu1  ;;  %v935_v45 = vadd.f32 %v2866_v62, %v887_v10 }
0x1e9a   :  { %2481 = vpow2.f32 %v2121_v14 }
0x1e9b   :  { %v2298_v12 = vpop.f32.mrf.mxu1  ;;  %v2109_v14 = vmul.f32 -1.442695, %v935_v45 }
0x1ea5   :  { %v2480_v13 = vpop.eup %2479 }
0x1ea6   :  { %1424 = vrot.lane.b32.xlu0 %v2480_v13, %s2542_s2 }
0x1ea7   :  { %v2482_v15 = vpop.eup %2481 }
0x1ea8   :  { %v1418_v19 = vadd.f32 1.0, %v2482_v15 }
0x1eaa   :  { %2483 = vrcp.f32 %v1418_v19 }
0x1eb7   :  { %v2484_v51 = vpop.eup %2483 }
0x1eb8   :  { %v1422_v23 = vmul.f32 %v2484_v51, %v1352_v2 }
0x1f18   :  { %v1425_v21 = vpop.permute.xlu0 %1424 }
0x1f19   :  { %v1427_v22 = vmul.f32 %v2484_v51, %v1425_v21 }
0x1f1b   :  { %1429 = vrot.lane.b32.xlu1 %v1427_v22, %s2543_s29 }
0x1f8d   :  { %v1430_v24 = vpop.permute.xlu1 %1429 }
0x1f8e   :  { %v1432_v25 = vadd.f32 %v1430_v24, %v1422_v23 }
0x1f90   :  { %2485 = vtanh.f32 %v1432_v25 }
0x1f9d   :  { %v2486_v27 = vpop.eup %2485 }
0x1f9e   :  { %1435 = vrot.lane.b32.xlu0 %v2486_v27, %s2544_s30 }
0x1fa2   :  { %290 = vrot.lane.b32.xlu0 %v245_v56, %s2546_s15 }
0x2010   :  { %v1436_v29 = vpop.permute.xlu0 %1435 }
0x2011   :  { %v2947_v30 = vmul.f32 %v2484_v51, %v1436_v29 }
0x2013   :  { %v1447_v58 = vpack.c.bf16 %v2947_v30, %v2947_v30 }
0x2014   :  { %v291_v63 = vpop.permute.xlu0 %290 }
0x2015   :  { %313 = vst.msk [vmem:[#allocation3 + $0x2] sm:$0x3] %vm223_vm2, %v291_v63  ;;  %1449 = vrot.lane.b32.xlu1 %v1447_v58, %s2545_s14 }
0x201c   :  { %v1446_v52 = vld [vmem:[#allocation3 + $0x2] sm:$0x3] }
0x2087   :  { %v1450_v32 = vpop.permute.xlu1 %1449 }
0x2088   :  { %2302 = vmatmul.mubr.msk.bf16.vlgmr.msra.gmra.mxu0 %vm331_vm3, %v1450_v32 }
0x2089   :  { %2315 = vmatprep.mubr.msk.bf16.mxu0 %vm2538_vm0, %v2537_v1 }
0x2148   :  { %v1488_v48 = vpop.f32.mrf.mxu0 }
0x2149   :  { %v1494_v56 = vadd.f32 %v1488_v48, %v1446_v52 }
0x214a   :  { %v2303_v60 = vpop.f32.mrf.mxu0 }
0x214b   :  { %2487 = vtanh.f32 %v1494_v56  ;;  %v2123_v36 = vmul.f32 -1.442695, %v1494_v56 }
0x214c   :  { %v1491_v16 = vpop.f32.mrf.mxu0 }
0x214d   :  { %2489 = vpow2.f32 %v2123_v36 }
0x214e   :  { %v2304_v34 = vpop.f32.mrf.mxu0 }
0x2158   :  { %v2488_v35 = vpop.eup %2487 }
0x2159   :  { %1504 = vrot.lane.b32.xlu1 %v2488_v35, %s2542_s2 }
0x215a   :  { %v2490_v37 = vpop.eup %2489 }
0x215b   :  { %v1498_v39 = vadd.f32 1.0, %v2490_v37 }
0x215d   :  { %2491 = vrcp.f32 %v1498_v39 }
0x216a   :  { %v2492_v38 = vpop.eup %2491 }
0x216b   :  { %v1502_v61 = vmul.f32 %v2492_v38, %v1432_v25 }
0x21cb   :  { %v1505_v46 = vpop.permute.xlu1 %1504 }
0x21cc   :  { %v1507_v53 = vmul.f32 %v2492_v38, %v1505_v46 }
0x21ce   :  { %1509 = vrot.lane.b32.xlu0 %v1507_v53, %s2543_s29 }
0x2240   :  { %v1510_v4 = vpop.permute.xlu0 %1509 }
0x2241   :  { %v1512_v57 = vadd.f32 %v1510_v4, %v1502_v61 }
0x2243   :  { %2493 = vtanh.f32 %v1512_v57 }
0x2250   :  { %v2494_v0 = vpop.eup %2493 }
0x2251   :  { %1515 = vrot.lane.b32.xlu1 %v2494_v0, %s2544_s30 }
0x2255   :  { %288 = vrot.lane.b32.xlu1 %v238_v50, %s2546_s15 }
0x22c3   :  { %v1516_v2 = vpop.permute.xlu1 %1515 }
0x22c4   :  { %v1518_v5 = vmul.f32 %v2492_v38, %v1516_v2 }
0x22c6   :  { %v1526_v7 = vpack.c.bf16 %v1518_v5, %v1518_v5 }
0x22c7   :  { %v289_v9 = vpop.permute.xlu1 %288 }
0x22c8   :  { %312 = vst.msk [vmem:[#allocation3] sm:$0x3] %vm223_vm2, %v289_v9  ;;  %1528 = vrot.lane.b32.xlu0 %v1526_v7, %s2545_s14 }
0x22cf   :  { %v1525_v59 = vld [vmem:[#allocation3] sm:$0x3] }
0x233a   :  { %v1529_v54 = vpop.permute.xlu0 %1528 }
0x233b   :  { %2308 = vmatmul.mubr.msk.bf16.vlgmr.msra.gmra.mxu1 %vm331_vm3, %v1529_v54  ;;  %v2375_v54 = vld [vmem:[%s3120_s5] sm:$0xff]  }
0x233c   :  { %2323 = vmatprep.mubr.msk.bf16.mxu1 %vm2538_vm0, %v2537_v1 }
0x23fb   :  { %v1567_v47 = vpop.f32.mrf.mxu1 }
0x23fc   :  { %v1573_v55 = vadd.f32 %v1567_v47, %v1525_v59 }
0x23fd   :  { %v2309_v40 = vpop.f32.mrf.mxu1 }
0x23fe   :  { %2495 = vtanh.f32 %v1573_v55  ;;  %v2125_v13 = vmul.f32 -1.442695, %v1573_v55 }
0x23ff   :  { %v1570_v50 = vpop.f32.mrf.mxu1  ;;  %2497 = vtanh.f32 %v935_v45 }
0x2400   :  { %2499 = vpow2.f32 %v2125_v13 }
0x2401   :  { %v2310_v26 = vpop.f32.mrf.mxu1  ;;  %2501 = vpow2.f32 %v2109_v14 }
0x240b   :  { %v2496_v11 = vpop.eup %2495 }
0x240c   :  { %1583 = vrot.lane.b32.xlu0 %v2496_v11, %s2542_s2  ;;  %v2498_v12 = vpop.eup %2497 }
0x240d   :  { %v2500_v15 = vpop.eup %2499 }
0x240e   :  { %v1577_v19 = vadd.f32 1.0, %v2500_v15  ;;  %v2502_v51 = vpop.eup %2501 }
0x240f   :  { %v939_v21 = vadd.f32 1.0, %v2502_v51 }
0x2410   :  { %945 = vrot.lane.b32.xlu0 %v2498_v12, %s2542_s2  ;;  %2503 = vrcp.f32 %v1577_v19 }
0x2411   :  { %2505 = vrcp.f32 %v939_v21 }
0x241d   :  { %v2504_v62 = vpop.eup %2503 }
0x241e   :  { %v2506_v24 = vpop.eup %2505  ;;  %v1581_v29 = vmul.f32 %v2504_v62, %v1512_v57 }
0x241f   :  { %v943_v32 = vmul.f32 %v2506_v24, %v2836_v33 }
0x247e   :  { %v1584_v22 = vpop.permute.xlu0 %1583 }
0x247f   :  { %v1586_v23 = vmul.f32 %v2504_v62, %v1584_v22 }
0x2481   :  { %1588 = vrot.lane.b32.xlu1 %v1586_v23, %s2543_s29 }
0x2482   :  { %v946_v25 = vpop.permute.xlu0 %945 }
0x2483   :  { %v948_v27 = vmul.f32 %v2506_v24, %v946_v25 }
0x2485   :  { %950 = vrot.lane.b32.xlu1 %v948_v27, %s2543_s29 }
0x2489   :  { %1520 = vrot.lane.b32.xlu1 %v1518_v5, %s2545_s14 }
0x248d   :  { %1440 = vrot.lane.b32.xlu1 %v2947_v30, %s2545_s14 }
0x2491   :  { %1280 = vrot.lane.b32.xlu1 %v2911_v31, %s2545_s14 }
0x24f3   :  { %v1589_v58 = vpop.permute.xlu1 %1588 }
0x24f4   :  { %v1591_v63 = vadd.f32 %v1589_v58, %v1581_v29 }
0x24f6   :  { %2507 = vtanh.f32 %v1591_v63 }
0x24f7   :  { %v951_v52 = vpop.permute.xlu1 %950 }
0x24f8   :  { %v953_v48 = vadd.f32 %v951_v52, %v943_v32 }
0x24fa   :  { %2509 = vtanh.f32 %v953_v48 }
0x24fb   :  { %v1521_v56 = vpop.permute.xlu1 %1520 }
0x24fc   :  { %1524 = vst.msk [vmem:[#allocation5 + $0x2] sm:$0x3] %vm404_vm4, %v1521_v56 }
0x24ff   :  { %v1441_v60 = vpop.permute.xlu1 %1440 }
0x2500   :  { %1444 = vst.msk [vmem:[#allocation5 + $0x4] sm:$0x3] %vm404_vm4, %v1441_v60 }
0x2503   :  { %v2508_v30 = vpop.eup %2507  ;;  %v1281_v16 = vpop.permute.xlu1 %1280  ;;  %v1612_v38 = vld [vmem:[#allocation5 + $0x2] sm:$0x3] }
0x2504   :  { %1284 = vst.msk [vmem:[#allocation5 + $0x8] sm:$0x3] %vm404_vm4, %v1281_v16  ;;  %1594 = vrot.lane.b32.xlu0 %v2508_v30, %s2544_s30  ;;  %v1635_v61 = vsel %vm404_vm4, %v1612_v38, 0.0 }
0x2507   :  { %v2510_v31 = vpop.eup %2509  ;;  %v1613_v53 = vld [vmem:[#allocation5 + $0x4] sm:$0x3] }
0x2508   :  { %956 = vrot.lane.b32.xlu1 %v2510_v31, %s2544_s30  ;;  %v1637_v4 = vsel %vm404_vm4, %v1613_v53, 0.0  ;;  %v2377_v53 = vld [vmem:[%s3120_s5 + $0x20] sm:$0xff]  }
0x250b   :  { %v1615_v2 = vld [vmem:[#allocation5 + $0x8] sm:$0x3] }
0x250c   :  { %1040 = vrot.lane.b32.xlu1 %v2846_v49, %s2545_s14  ;;  %v1641_v59 = vsel %vm404_vm4, %v1615_v2, 0.0 }
0x2510   :  { %481 = vrot.lane.b32.xlu1 %v2755_v41, %s2545_s14 }
0x2514   :  { %641 = vrot.lane.b32.xlu1 %v2781_v42, %s2545_s14 }
0x2518   :  { %801 = vrot.lane.b32.xlu1 %v2811_v44, %s2545_s14  ;;  %v2372_v44 = vld [vmem:[%s3120_s5 + $0x18] sm:$0xff]  }
0x2519   :  { %2312 = vmatpush3.bf16.msra.mxu0 %v2372_v44 }
0x251a   :  { %2313 = vmatprep.subr.bf16.mxu0 %v2537_v1 }
0x2576   :  { %v1595_v33 = vpop.permute.xlu0 %1594 }
0x2577   :  { %v1597_v34 = vmul.f32 %v2504_v62, %v1595_v33 }
0x2579   :  { %1599 = vrot.lane.b32.xlu0 %v1597_v34, %s2545_s14 }
0x257a   :  { %v957_v35 = vpop.permute.xlu1 %956 }
0x257b   :  { %v959_v36 = vmul.f32 %v2506_v24, %v957_v35 }
0x257d   :  { %961 = vrot.lane.b32.xlu1 %v959_v36, %s2545_s14  ;;  %1360 = vrot.lane.b32.xlu0 %v2929_v8, %s2545_s14 }
0x257e   :  { %v1041_v49 = vpop.permute.xlu1 %1040 }
0x257f   :  { %1044 = vst.msk [vmem:[#allocation5 + $0xe] sm:$0x3] %vm404_vm4, %v1041_v49 }
0x2581   :  { %1200 = vrot.lane.b32.xlu0 %v2893_v6, %s2545_s14  ;;  %v2373_v6 = vld [vmem:[%s3120_s5 + $0x8] sm:$0xff]  }
0x2582   :  { %v482_v41 = vpop.permute.xlu1 %481  ;;  %2320 = vmatpush3.bf16.msra.mxu1 %v2373_v6 }
0x2583   :  { %485 = vst.msk [vmem:[#allocation4 + $0x2] sm:$0x3] %vm404_vm4, %v482_v41  ;;  %2321 = vmatprep.subr.bf16.mxu1 %v2537_v1 }
0x2585   :  { %1120 = vrot.lane.b32.xlu0 %v2875_v28, %s2545_s14  ;;  %v2374_v28 = vld [vmem:[%s3120_s5 + $0x10] sm:$0xff]  }
0x2586   :  { %v642_v42 = vpop.permute.xlu1 %641  ;;  %2314 = vmatpush3.bf16.msra.mxu0 %v2374_v28  ;;  %2322 = vmatpush3.bf16.msra.mxu1 %v2375_v54  ;;  %v1618_v26 = vld [vmem:[#allocation5 + $0xe] sm:$0x3]  ;;  %v2376_v28 = vld [vmem:[%s3120_s5 + $0x28] sm:$0xff]  }
0x2587   :  { %645 = vst.msk [vmem:[#allocation4 + $0x6] sm:$0x3] %vm404_vm4, %v642_v42  ;;  %2327 = vmatprep.subr.bf16.mxu0 %v2537_v1  ;;  %2335 = vmatprep.subr.bf16.mxu1 %v2537_v1  ;;  %v1647_v14 = vsel %vm404_vm4, %v1618_v26, 0.0 }
0x2589   :  { %401 = vrot.lane.b32.xlu0 %v2742_v18, %s2545_s14 }
0x258a   :  { %v802_v8 = vpop.permute.xlu1 %801  ;;  %v1604_v23 = vld [vmem:[#allocation4 + $0x2] sm:$0x3] }
0x258b   :  { %805 = vst.msk [vmem:[#allocation4 + $0xa] sm:$0x3] %vm404_vm4, %v802_v8  ;;  %v1620_v27 = vsel %vm404_vm4, %v1604_v23, 0.0 }
0x258d   :  { %561 = vrot.lane.b32.xlu0 %v2768_v17, %s2545_s14 }
0x258e   :  { %v1606_v63 = vld [vmem:[#allocation4 + $0x6] sm:$0x3] }
0x258f   :  { %v1624_v48 = vsel %vm404_vm4, %v1606_v63, 0.0 }
0x2591   :  { %721 = vrot.lane.b32.xlu0 %v2794_v20, %s2545_s14 }
0x2592   :  { %v1608_v30 = vld [vmem:[#allocation4 + $0xa] sm:$0x3] }
0x2593   :  { %v1628_v33 = vsel %vm404_vm4, %v1608_v30, 0.0 }
0x2595   :  { %881 = vrot.lane.b32.xlu0 %v2841_v43, %s2545_s14 }
0x25eb   :  { %v1600_v18 = vpop.permute.xlu0 %1599 }
0x25ec   :  { %1602 = vst.msk [vmem:[#allocation5] sm:$0x3] %vm404_vm4, %v1600_v18 }
0x25ef   :  { %v962_v37 = vpop.permute.xlu1 %961  ;;  %v1361_v39 = vpop.permute.xlu0 %1360 }
0x25f0   :  { %965 = vst.msk [vmem:[#allocation4 + $0xe] sm:$0x3] %vm404_vm4, %v962_v37  ;;  %1364 = vst.msk [vmem:[#allocation5 + $0x6] sm:$0x3] %vm404_vm4, %v1361_v39 }
0x25f3   :  { %v1201_v17 = vpop.permute.xlu0 %1200  ;;  %v1611_v46 = vld [vmem:[#allocation5] sm:$0x3] }
0x25f4   :  { %1204 = vst.msk [vmem:[#allocation5 + $0xa] sm:$0x3] %vm404_vm4, %v1201_v17  ;;  %v1634_v20 = vsel %vm404_vm4, %v1611_v46, 0.0 }
0x25f5   :  { %v1636_v43 = vadd.f32 %v1635_v61, %v1634_v20 }
0x25f7   :  { %v1121_v57 = vpop.permute.xlu0 %1120  ;;  %v1614_v0 = vld [vmem:[#allocation5 + $0x6] sm:$0x3]  ;;  %v1638_v5 = vadd.f32 %v1637_v4, %v1636_v43  ;;  %v1610_v36 = vld [vmem:[#allocation4 + $0xe] sm:$0x3]  ;;  %v2378_v43 = vld [vmem:[%s3122_s7] sm:$0xff]  }
0x25f8   :  { %1124 = vst.msk [vmem:[#allocation5 + $0xc] sm:$0x3] %vm404_vm4, %v1121_v57  ;;  %v1639_v7 = vsel %vm404_vm4, %v1614_v0, 0.0  ;;  %v1632_v41 = vsel %vm404_vm4, %v1610_v36, 0.0  ;;  %v2379_v4 = vld [vmem:[%s3124_s9 + $0x8] sm:$0xff]  }
0x25f9   :  { %v1640_v9 = vadd.f32 %v1639_v7, %v1638_v5 }
0x25fb   :  { %v402_v47 = vpop.permute.xlu0 %401  ;;  %v1616_v55 = vld [vmem:[#allocation5 + $0xa] sm:$0x3]  ;;  %v1642_v10 = vadd.f32 %v1641_v59, %v1640_v9 }
0x25fc   :  { %405 = vst.msk [vmem:[#allocation4] sm:$0x3] %vm404_vm4, %v402_v47  ;;  %v1643_v40 = vsel %vm404_vm4, %v1616_v55, 0.0 }
0x25fd   :  { %v1644_v11 = vadd.f32 %v1643_v40, %v1642_v10  ;;  %v2143_v10 = vld [vmem:[%s3121_s6] ss:$0 sm:$0xff] }
0x25ff   :  { %v562_v45 = vpop.permute.xlu0 %561  ;;  %v1617_v50 = vld [vmem:[#allocation5 + $0xc] sm:$0x3] }
0x2600   :  { %565 = vst.msk [vmem:[#allocation4 + $0x4] sm:$0x3] %vm404_vm4, %v562_v45  ;;  %v1645_v12 = vsel %vm404_vm4, %v1617_v50, 0.0 }
0x2601   :  { %v1646_v13 = vadd.f32 %v1645_v12, %v1644_v11 }
0x2603   :  { %v722_v15 = vpop.permute.xlu0 %721  ;;  %v1648_v19 = vadd.f32 %v1647_v14, %v1646_v13  ;;  %v1603_v22 = vld [vmem:[#allocation4] sm:$0x3]  ;;  %v2381_v14 = vld [vmem:[%s3126_s11 + $0x8] sm:$0xff]  }
0x2604   :  { %725 = vst.msk [vmem:[#allocation4 + $0x8] sm:$0x3] %vm404_vm4, %v722_v15  ;;  %v1619_v25 = vsel %vm404_vm4, %v1603_v22, 0.0  ;;  %v2380_v13 = vld [vmem:[%s3124_s9] sm:$0xff]  }
0x2605   :  { %1664 = vrot.lane.b32.xlu0 %v1648_v19, %s2543_s29  ;;  %v1652_v51 = vsub.f32 %v1648_v19, %v1618_v26  ;;  %v1787_v62 = vsub.f32 %v1648_v19, %v1611_v46  ;;  %v1621_v58 = vadd.f32 %v1620_v27, %v1619_v25  ;;  %v2144_v15 = vld [vmem:[%s3123_s8] ss:$0 sm:$0xff] }
0x2606   :  { %v2382_v25 = vld [vmem:[%s3126_s11] sm:$0xff]  }
0x2607   :  { %1654 = vrot.lane.b32.xlu1 %v1652_v51, %s2543_s29  ;;  %v882_v21 = vpop.permute.xlu0 %881  ;;  %v1605_v24 = vld [vmem:[#allocation4 + $0x4] sm:$0x3] }
0x2608   :  { %885 = vst.msk [vmem:[#allocation4 + $0xc] sm:$0x3] %vm404_vm4, %v882_v21  ;;  %v1622_v29 = vsel %vm404_vm4, %v1605_v24, 0.0 }
0x2609   :  { %1789 = vrot.lane.b32.xlu0 %v1787_v62, %s2543_s29  ;;  %v1623_v32 = vadd.f32 %v1622_v29, %v1621_v58 }
0x260b   :  { %v1607_v52 = vld [vmem:[#allocation4 + $0x8] sm:$0x3]  ;;  %v1625_v56 = vadd.f32 %v1624_v48, %v1623_v32 }
0x260c   :  { %v1626_v60 = vsel %vm404_vm4, %v1607_v52, 0.0 }
0x260d   :  { %v1627_v16 = vadd.f32 %v1626_v60, %v1625_v56  ;;  %v2059_v56 = vand.u32 127, %v80_v3  ;;  %v2151_v60 = vld [vmem:[%s3127_s12] ss:$0 sm:$0xff] }
0x260f   :  { %v1609_v31 = vld [vmem:[#allocation4 + $0xc] sm:$0x3]  ;;  %v1629_v34 = vadd.f32 %v1628_v33, %v1627_v16  ;;  %vm2060_vm5 = vcmp.lt.s32.totalorder %v2059_v56, 4 }
0x2610   :  { %v1630_v35 = vsel %vm404_vm4, %v1609_v31, 0.0 }
0x2611   :  { %v1631_v49 = vadd.f32 %v1630_v35, %v1629_v34 }
0x2613   :  { %v1633_v42 = vadd.f32 %v1632_v41, %v1631_v49 }
0x2615   :  { %v1650_v8 = vsub.f32 %v1633_v42, %v1610_v36  ;;  %v1785_v46 = vsub.f32 %v1633_v42, %v1603_v22 }
0x2677   :  { %v1665_v44 = vpop.permute.xlu0 %1664 }
0x2678   :  { %v1667_v6 = vsel %vm331_vm3, %v1633_v42, %v1665_v44 }
0x2679   :  { %v1668_v18 = vpack.c.bf16 %v1667_v6, %v1667_v6  ;;  %v1655_v37 = vpop.permute.xlu1 %1654 }
0x267a   :  { %v1657_v39 = vsel %vm331_vm3, %v1650_v8, %v1655_v37 }
0x267b   :  { %v1658_v38 = vpack.c.bf16 %v1657_v39, %v1657_v39  ;;  %2316 = vmatmul.mubr.msk.bf16.vlgmr.msra.gmra.mxu0 %vm134_vm1, %v1668_v18  ;;  %v1790_v17 = vpop.permute.xlu0 %1789 }
0x267c   :  { %2328 = vmatpush3.bf16.msra.mxu0 %v2376_v28  ;;  %2331 = vmatprep.mubr.msk.bf16.mxu0 %vm2538_vm0, %v2537_v1  ;;  %v1792_v20 = vsel %vm331_vm3, %v1785_v46, %v1790_v17 }
0x267d   :  { %2324 = vmatmul.mubr.msk.bf16.vlgmr.msra.gmra.mxu1 %vm134_vm1, %v1658_v38  ;;  %2329 = vmatprep.subr.bf16.mxu0 %v2537_v1  ;;  %v1793_v61 = vpack.c.bf16 %v1792_v20, %v1792_v20 }
0x267e   :  { %2337 = vmatprep.mubr.msk.bf16.mxu1 %vm2538_vm0, %v2537_v1  ;;  %2336 = vmatpush3.bf16.msra.mxu1 %v2378_v43 }
0x267f   :  { %2349 = vmatprep.subr.bf16.mxu1 %v2537_v1 }
0x2680   :  { %2330 = vmatpush3.bf16.msra.mxu0 %v2377_v53 }
0x2681   :  { %2341 = vmatprep.subr.bf16.mxu0 %v2537_v1 }
0x2683   :  { %2332 = vmatmul.mubr.msk.bf16.vlgmr.msra.gmra.mxu0 %vm134_vm1, %v1793_v61 }
0x2684   :  { %2345 = vmatprep.mubr.msk.bf16.mxu0 %vm2538_vm0, %v2537_v1  ;;  %2342 = vmatpush3.bf16.msra.mxu0 %v2379_v4 }
0x2685   :  { %2343 = vmatprep.subr.bf16.mxu0 %v2537_v1 }
0x2688   :  { %2344 = vmatpush3.bf16.msra.mxu0 %v2380_v13 }
0x273b   :  { %v1723_v57 = vpop.f32.mrf.mxu0 }
0x273d   :  { %v2317_v0 = vpop.f32.mrf.mxu0  ;;  %v1778_v2 = vpop.f32.mrf.mxu1 }
0x273e   :  { %v1779_v59 = vadd.f32 %v1778_v2, %v1723_v57 }
0x273f   :  { %v1726_v5 = vpop.f32.mrf.mxu0  ;;  %v2325_v7 = vpop.f32.mrf.mxu1 }
0x2741   :  { %v2318_v9 = vpop.f32.mrf.mxu0  ;;  %v1781_v54 = vpop.f32.mrf.mxu1 }
0x2743   :  { %v2326_v47 = vpop.f32.mrf.mxu1  ;;  %v1848_v55 = vpop.f32.mrf.mxu0 }
0x2744   :  { %v1854_v40 = vadd.f32 %v1848_v55, %v1779_v59 }
0x2745   :  { %v2333_v45 = vpop.f32.mrf.mxu0 }
0x2746   :  { %v1862_v50 = vadd.f32 %v2143_v10, %v1854_v40 }
0x2747   :  { %v1851_v26 = vpop.f32.mrf.mxu0 }
0x2748   :  { %v1863_v11 = vpack.c.bf16 %v1862_v50, %v1862_v50 }
0x2749   :  { %v2334_v12 = vpop.f32.mrf.mxu0 }
0x274a   :  { %2338 = vmatmul.mubr.msk.bf16.vlgmr.msra.gmra.mxu1 %vm331_vm3, %v1863_v11 }
0x274b   :  { %2353 = vmatprep.mubr.msk.bf16.mxu1 %vm2538_vm0, %v2537_v1  ;;  %2350 = vmatpush3.bf16.msra.mxu1 %v2381_v14 }
0x274c   :  { %2351 = vmatprep.subr.bf16.mxu1 %v2537_v1  ;;  %v2147_v1 = vld [vmem:[%s3125_s10] ss:$0 sm:$0xff]  ;;  %s2547_s10 = smov [#allocation6]  }
0x274d   :  { %s2082_s11 = sshll.u32 %s2547_s10, 4  ;;  %s2083_s11 = int_to_ptr.vmem [resolvable:$true] %s2082_s11 }
0x274e   :  { %s2515_s12 = scalar_lea.vmem %s2083_s11, 32  ;;  %p2520_p1 = scmp.lt.s32.totalorder %s2083_s11, %s2083_s11 }
0x274f   :  { %2352 = vmatpush3.bf16.msra.mxu1 %v2382_v25  ;;  %p2516_p0 = scmp.ne.s32.totalorder %s2083_s11, %s2515_s12  ;;  %p2521_p2 = scmp.lt.s32.totalorder %s2515_s12, %s2515_s12 }
0x2751   :  { %p2522_p3 = por %p2521_p2, %p2520_p1 }
0x2753   :  { %p2523_p4 = pnand %p2522_p3, %p2516_p0 }
0x280a   :  { %v1916_v19 = vpop.f32.mrf.mxu1 }
0x280b   :  { %v1917_v51 = vadd.f32 %v2144_v15, %v1916_v19 }
0x280c   :  { %v2339_v21 = vpop.f32.mrf.mxu1 }
0x280d   :  { %v1922_v62 = vmax.f32 %v1917_v51, 0.0 }
0x280e   :  { %v1919_v22 = vpop.f32.mrf.mxu1 }
0x280f   :  { %v1923_v23 = vpack.c.bf16 %v1922_v62, %v1922_v62 }
0x2810   :  { %v2340_v24 = vpop.f32.mrf.mxu1 }
0x2811   :  { %2346 = vmatmul.mubr.msk.bf16.vlgmr.msra.gmra.mxu0 %vm134_vm1, %v1923_v23 }
0x28d1   :  { %v1984_v27 = vpop.f32.mrf.mxu0 }
0x28d2   :  { %v1985_v29 = vadd.f32 %v2147_v1, %v1984_v27 }
0x28d3   :  { %v2347_v58 = vpop.f32.mrf.mxu0 }
0x28d4   :  { %v1990_v63 = vmax.f32 %v1985_v29, 0.0 }
0x28d5   :  { %v1987_v32 = vpop.f32.mrf.mxu0 }
0x28d6   :  { %v1991_v52 = vpack.c.bf16 %v1990_v63, %v1990_v63 }
0x28d7   :  { %v2348_v48 = vpop.f32.mrf.mxu0 }
0x28d8   :  { %2354 = vmatmul.mubr.msk.bf16.vlgmr.msra.gmra.mxu1 %vm134_vm1, %v1991_v52 }
0x2998   :  { %v2052_v30 = vpop.f32.mrf.mxu1 }
0x2999   :  { %v2053_v16 = vadd.f32 %v2151_v60, %v2052_v30 }
0x299a   :  { %v2355_v31 = vpop.f32.mrf.mxu1 }
0x299b   :  { %v2061_v33 = vsel %vm2060_vm5, %v2053_v16, -inf }
0x299c   :  { %v2055_v34 = vpop.f32.mrf.mxu1  ;;  %v2063_v35 = vsel %vm2062_vm6, %v2061_v33, -inf }
0x299d   :  { %2064 = vmax.xlane.f32.xlu1 %v2063_v35 }
0x299e   :  { %v2356_v36 = vpop.f32.mrf.mxu1 }
0x2a26   :  { %v2065_v49 = vpop.xlane.xlu1 %2064 }
0x2a27   :  { %v2066_v41 = vsub.f32 %v2053_v16, %v2065_v49 }
0x2a29   :  { %v2067_v42 = vmul.f32 1.442695, %v2066_v41 }
0x2a2b   :  { %2511 = vpow2.f32 %v2067_v42 }
0x2a38   :  { %v2512_v44 = vpop.eup %2511 }
0x2a39   :  { %v2069_v3 = vsel %vm2060_vm5, %v2512_v44, 0.0 }
0x2a3a   :  { %v2070_v6 = vsel %vm2062_vm6, %v2069_v3, 0.0 }
0x2a3b   :  { %2071 = vadd.xlane.f32.xlu0 %v2070_v6 }
0x2ac4   :  { %v2072_v8 = vpop.xlane.xlu0 %2071 }
0x2ac5   :  { %2513 = vrcp.f32 %v2072_v8 }
0x2ad2   :  { %v2514_v28 = vpop.eup %2513 }
0x2ad3   :  { %v2074_v18 = vmul.f32 %v2514_v28, %v2069_v3 }
0x2ad5   :  { %2075 = vst [vmem:[#allocation6] sm:$0x3] %v2074_v18 }
0x2ad6   :  { %2526 = shalt.err (!%p2523_p4)
}
0x2ad7   :  { %2085 = dma.vmem_to_hbm [thread:$0]  %s2083_s11, 32, %s3128_s13, [#allocation7]  }
0x2ad8   :  { %2535 = dma.done.wait [#allocation7], 32  }
0x2ad9   :  { %2536 = vsyncadd [#allocation7], 4294967264 }
0x2ada   :  { %2089 = vsyncpa [#allocation7], 1 }

</bundles_post_ra>
